<compile_context>
chip_gen: v6e
topology: v6e:2x2x1
jax: 0.10.0
libtpu: 0.0.40
codegen_flags: <defaults>
</compile_context>

<pallas_src>
import functools

import jax
import jax.numpy as jnp
from jax.experimental import pallas as pl
from jax.experimental.pallas import tpu as pltpu


# ------------------------- model config (toy BERT) --------------------------

VOCAB = 128          # MXU-aligned toy vocabulary
MAX_POS = 64
TYPE_VOCAB = 2
HIDDEN = 32
N_HEADS = 2
HEAD_DIM = HIDDEN // N_HEADS
FFN = 64
N_LAYERS = 2
N_CLASSES = 2


# ----------------------------- fused Pallas kernel ---------------------------


def _bert_fused_kernel(
    ids_ref, seg_ids_ref, mask_ref,
    word_emb_ref, pos_ref, seg_emb_ref, emb_g_ref, emb_b_ref,
    wqkv_ref, bqkv_ref, wo_ref, bo_ref, ln1g_ref, ln1b_ref,
    w1_ref, b1_ref, w2_ref, b2_ref, ln2g_ref, ln2b_ref,
    poolw_ref, poolb_ref, clsw_ref, clsb_ref,
    logits_ref, soft_ref,
    *, S, n_heads, head_dim, n_layers, eps,
):
    """Processes ONE example (grid program b): embeddings -> 2 encoder layers
    -> pooler -> classifier -> softmax, entirely in VMEM."""
    H = n_heads * head_dim
    vocab = word_emb_ref.shape[0]

    def layer_norm(x, g, b):
        mu = jnp.mean(x, axis=-1, keepdims=True)
        var = jnp.mean((x - mu) ** 2, axis=-1, keepdims=True)
        return (x - mu) * jax.lax.rsqrt(var + eps) * g + b

    # ---------------- fused embedding lookup (no XLA gathers) ----------------
    ids = ids_ref[0]                                     # (S, 1) int32
    seg_t = seg_ids_ref[0].astype(jnp.float32)           # (S, 1), values in {0,1}

    vocab_iota = jax.lax.broadcasted_iota(jnp.int32, (S, vocab), 1)
    word_onehot = (vocab_iota == ids).astype(jnp.float32)          # (S, V)
    word = jnp.dot(word_onehot, word_emb_ref[...],
                   preferred_element_type=jnp.float32)             # (S, H)

    # Segment (token-type) embedding: binary lerp between the 2 rows (VPU only).
    seg = (1.0 - seg_t) * seg_emb_ref[0:1, :] + seg_t * seg_emb_ref[1:2, :]

    # pos_ref is already the first S rows of the position table (BlockSpec slice).
    h = layer_norm(word + pos_ref[...] + seg, emb_g_ref[...], emb_b_ref[...])

    # Additive key-padding mask, materialized ONCE at (S, S) and reused by
    # every head / layer (JAX does not CSE broadcast_in_dim).
    add_mask = jnp.broadcast_to((1.0 - mask_ref[0]) * -1e9, (S, S))

    # ------------------------------ encoder ----------------------------------
    for l in range(n_layers):
        # Single fused QKV projection per layer: (S, H) @ (H, 3H).
        # 1/sqrt(head_dim) is folded into the Wq block at init time.
        qkv = (jnp.dot(h, wqkv_ref[l], preferred_element_type=jnp.float32)
               + bqkv_ref[l])                                      # (S, 3H)

        attn_out = None
        for hd in range(n_heads):
            q = qkv[:, hd * head_dim:(hd + 1) * head_dim]          # (S, dH)
            k = qkv[:, H + hd * head_dim:H + (hd + 1) * head_dim]  # (S, dH)
            v = qkv[:, 2 * H + hd * head_dim:2 * H + (hd + 1) * head_dim]

            # 2-D score matmul contracting the last axes of q and k.
            s = jax.lax.dot_general(
                q, k, (((1,), (1,)), ((), ())),
                preferred_element_type=jnp.float32) + add_mask     # (S, S)
            m = jnp.max(s, axis=-1, keepdims=True)
            p = jnp.exp(s - m)
            p = p * pl.reciprocal(jnp.sum(p, axis=-1, keepdims=True), approx=True)

            ctx = jnp.dot(p, v, preferred_element_type=jnp.float32)   # (S, dH)
            # Row-split output projection: sum_h ctx_h @ Wo[h] == concat(ctx) @ Wo.
            o = jnp.dot(ctx, wo_ref[l, hd], preferred_element_type=jnp.float32)
            attn_out = o if attn_out is None else attn_out + o

        attn_out = attn_out + bo_ref[l]
        h = layer_norm(h + attn_out, ln1g_ref[l], ln1b_ref[l])

        # TODO(synk): BERT uses exact erf GELU; tanh approximation kept (EUP path).
        ffn = jax.nn.gelu(
            jnp.dot(h, w1_ref[l], preferred_element_type=jnp.float32) + b1_ref[l],
            approximate=True)
        ffn = jnp.dot(ffn, w2_ref[l], preferred_element_type=jnp.float32) + b2_ref[l]
        h = layer_norm(h + ffn, ln2g_ref[l], ln2b_ref[l])

    # ------------------------- pooler / classifier ---------------------------
    # [CLS] is row 0 of this example's slab: a static sublane slice.
    cls_tok = h[0:1, :]                                             # (1, H)
    pooled = jnp.tanh(
        jnp.dot(cls_tok, poolw_ref[...], preferred_element_type=jnp.float32)
        + poolb_ref[...])
    logits = (jnp.dot(pooled, clsw_ref[...], preferred_element_type=jnp.float32)
              + clsb_ref[...])                                      # (1, 2)
    m = jnp.max(logits, axis=-1, keepdims=True)
    e = jnp.exp(logits - m)
    soft = e / jnp.sum(e, axis=-1, keepdims=True)   # exact division for the output

    logits_ref[0] = logits
    soft_ref[0] = soft


# ------------------------------ parameters ----------------------------------


def init_params(key):
    def nrm(k, shape, scale=0.02):
        return scale * jax.random.normal(k, shape, dtype=jnp.float32)

    ks = iter(jax.random.split(key, 16))
    L, nH, dH = N_LAYERS, N_HEADS, HEAD_DIM
    att_scale = 1.0 / (dH ** 0.5)

    # Fused QKV weights: [Wq | Wk | Wv] along the output axis, with the
    # 1/sqrt(head_dim) attention scale folded into the Wq block (and the bq
    # block of the fused bias, which is zero here).
    wq = nrm(next(ks), (L, HIDDEN, HIDDEN)) * att_scale
    wk = nrm(next(ks), (L, HIDDEN, HIDDEN))
    wv = nrm(next(ks), (L, HIDDEN, HIDDEN))
    wqkv = jnp.concatenate([wq, wk, wv], axis=-1)          # (L, H, 3H)
    bqkv = jnp.zeros((L, 1, 3 * HIDDEN), jnp.float32)

    return {
        "word_emb": nrm(next(ks), (VOCAB, HIDDEN)),
        "pos_emb": nrm(next(ks), (MAX_POS, HIDDEN)),
        "seg_emb": nrm(next(ks), (TYPE_VOCAB, HIDDEN)),
        "emb_ln_g": jnp.ones((1, HIDDEN), jnp.float32),
        "emb_ln_b": jnp.zeros((1, HIDDEN), jnp.float32),
        "wqkv": wqkv,
        "bqkv": bqkv,
        "wo": nrm(next(ks), (L, nH, dH, HIDDEN)),   # row-split output projection
        "bo": jnp.zeros((L, 1, HIDDEN), jnp.float32),
        "ln1_g": jnp.ones((L, 1, HIDDEN), jnp.float32),
        "ln1_b": jnp.zeros((L, 1, HIDDEN), jnp.float32),
        "w1": nrm(next(ks), (L, HIDDEN, FFN)),
        "b1": jnp.zeros((L, 1, FFN), jnp.float32),
        "w2": nrm(next(ks), (L, FFN, HIDDEN)),
        "b2": jnp.zeros((L, 1, HIDDEN), jnp.float32),
        "ln2_g": jnp.ones((L, 1, HIDDEN), jnp.float32),
        "ln2_b": jnp.zeros((L, 1, HIDDEN), jnp.float32),
        "pool_w": nrm(next(ks), (HIDDEN, HIDDEN)),
        "pool_b": jnp.zeros((1, HIDDEN), jnp.float32),
        "cls_w": nrm(next(ks), (HIDDEN, N_CLASSES)),
        "cls_b": jnp.zeros((1, N_CLASSES), jnp.float32),
    }


# ------------------------------- forward pass --------------------------------


def model_forward(params, input_ids, token_type_ids, attention_mask):
    """Mirrors Model.forward after tokenization. Returns (seq_logits, seq_soft)."""
    B, S = input_ids.shape

    # Reshape the tiny id/mask tensors so each per-example block keeps its last
    # two dims equal to the full array dims (clean Mosaic block shapes).
    ids3 = input_ids.reshape(B, S, 1).astype(jnp.int32)
    seg3 = token_type_ids.reshape(B, S, 1).astype(jnp.int32)
    mask3 = attention_mask.reshape(B, 1, S).astype(jnp.float32)

    kernel = functools.partial(
        _bert_fused_kernel, S=S, n_heads=N_HEADS, head_dim=HEAD_DIM,
        n_layers=N_LAYERS, eps=1e-12)

    def full_spec(arr):
        nd = arr.ndim
        return pl.BlockSpec(arr.shape, lambda b, _nd=nd: (0,) * _nd)

    operands_and_specs = [
        (ids3,  pl.BlockSpec((1, S, 1), lambda b: (b, 0, 0))),
        (seg3,  pl.BlockSpec((1, S, 1), lambda b: (b, 0, 0))),
        (mask3, pl.BlockSpec((1, 1, S), lambda b: (b, 0, 0))),
        (params["word_emb"], full_spec(params["word_emb"])),
        # Only the first S rows of the position table are needed.
        (params["pos_emb"], pl.BlockSpec((S, HIDDEN), lambda b: (0, 0))),
        (params["seg_emb"], full_spec(params["seg_emb"])),
        (params["emb_ln_g"], full_spec(params["emb_ln_g"])),
        (params["emb_ln_b"], full_spec(params["emb_ln_b"])),
        (params["wqkv"], full_spec(params["wqkv"])),
        (params["bqkv"], full_spec(params["bqkv"])),
        (params["wo"], full_spec(params["wo"])),
        (params["bo"], full_spec(params["bo"])),
        (params["ln1_g"], full_spec(params["ln1_g"])),
        (params["ln1_b"], full_spec(params["ln1_b"])),
        (params["w1"], full_spec(params["w1"])),
        (params["b1"], full_spec(params["b1"])),
        (params["w2"], full_spec(params["w2"])),
        (params["b2"], full_spec(params["b2"])),
        (params["ln2_g"], full_spec(params["ln2_g"])),
        (params["ln2_b"], full_spec(params["ln2_b"])),
        (params["pool_w"], full_spec(params["pool_w"])),
        (params["pool_b"], full_spec(params["pool_b"])),
        (params["cls_w"], full_spec(params["cls_w"])),
        (params["cls_b"], full_spec(params["cls_b"])),
    ]
    operands = [o for o, _ in operands_and_specs]
    in_specs = [s for _, s in operands_and_specs]

    seq_logits3, seq_soft3 = pl.pallas_call(
        kernel,
        grid=(B,),
        in_specs=in_specs,
        out_specs=(
            pl.BlockSpec((1, 1, N_CLASSES), lambda b: (b, 0, 0)),
            pl.BlockSpec((1, 1, N_CLASSES), lambda b: (b, 0, 0)),
        ),
        out_shape=(
            jax.ShapeDtypeStruct((B, 1, N_CLASSES), jnp.float32),
            jax.ShapeDtypeStruct((B, 1, N_CLASSES), jnp.float32),
        ),
        compiler_params=pltpu.CompilerParams(
            # One example per grid program: on v7x the two TensorCores each take
            # one example; on v5e/v6e this is a cheap 2-step sequential loop
            # (weight blocks keep the same index, so they are not re-copied).
            dimension_semantics=("parallel",),
            vmem_limit_bytes=32 * 1024 * 1024,
        ),
    )(*operands)

    return (seq_logits3.reshape(B, N_CLASSES),
            seq_soft3.reshape(B, N_CLASSES))


# ---------------------------------- main -------------------------------------

if __name__ == "__main__":
    # TODO(synk): HuggingFace BERT tokenizer (string -> ids) and pretrained
    # checkpoint loading have no Pallas/JAX equivalent; token ids, segment ids
    # and attention mask are synthesized deterministically here.
    B, S = 2, 16
    key = jax.random.PRNGKey(0)
    k_param, k_ids = jax.random.split(key)

    params = init_params(k_param)

    input_ids = jax.random.randint(k_ids, (B, S), 0, VOCAB, dtype=jnp.int32)
    # query tokens (segment 0) followed by question tokens (segment 1)
    token_type_ids = jnp.concatenate(
        [jnp.zeros((B, S // 2), jnp.int32), jnp.ones((B, S - S // 2), jnp.int32)],
        axis=1,
    )
    # second example padded at the tail
    attention_mask = jnp.stack(
        [
            jnp.ones((S,), jnp.float32),
            jnp.concatenate([jnp.ones((S - 4,), jnp.float32),
                             jnp.zeros((4,), jnp.float32)]),
        ],
        axis=0,
    )

    fwd = jax.jit(model_forward)
    seq_logits, seq_soft = fwd(params, input_ids, token_type_ids, attention_mask)
    jax.block_until_ready((seq_logits, seq_soft))

    assert seq_logits.shape == (B, 2) and seq_soft.shape == (B, 2)
    assert bool(jnp.all(jnp.isfinite(seq_logits))) and bool(jnp.all(jnp.isfinite(seq_soft)))
    assert bool(jnp.allclose(jnp.sum(seq_soft, axis=1), 1.0, atol=1e-5))
    print("KERNEL_OK")
</pallas_src>

<mosaic_0001>
module attributes {stable_mosaic.version = 11 : i64} {
  func.func @_bert_fused_kernel(%arg0: i32, %arg1: memref<1x16x1xi32, #tpu.memory_space<vmem>>, %arg2: memref<1x16x1xi32, #tpu.memory_space<vmem>>, %arg3: memref<1x1x16xf32, #tpu.memory_space<vmem>>, %arg4: memref<128x32xf32, #tpu.memory_space<vmem>>, %arg5: memref<16x32xf32, #tpu.memory_space<vmem>>, %arg6: memref<2x32xf32, #tpu.memory_space<vmem>>, %arg7: memref<1x32xf32, #tpu.memory_space<vmem>>, %arg8: memref<1x32xf32, #tpu.memory_space<vmem>>, %arg9: memref<2x32x96xf32, #tpu.memory_space<vmem>>, %arg10: memref<2x1x96xf32, #tpu.memory_space<vmem>>, %arg11: memref<2x2x16x32xf32, #tpu.memory_space<vmem>>, %arg12: memref<2x1x32xf32, #tpu.memory_space<vmem>>, %arg13: memref<2x1x32xf32, #tpu.memory_space<vmem>>, %arg14: memref<2x1x32xf32, #tpu.memory_space<vmem>>, %arg15: memref<2x32x64xf32, #tpu.memory_space<vmem>>, %arg16: memref<2x1x64xf32, #tpu.memory_space<vmem>>, %arg17: memref<2x64x32xf32, #tpu.memory_space<vmem>>, %arg18: memref<2x1x32xf32, #tpu.memory_space<vmem>>, %arg19: memref<2x1x32xf32, #tpu.memory_space<vmem>>, %arg20: memref<2x1x32xf32, #tpu.memory_space<vmem>>, %arg21: memref<32x32xf32, #tpu.memory_space<vmem>>, %arg22: memref<1x32xf32, #tpu.memory_space<vmem>>, %arg23: memref<32x2xf32, #tpu.memory_space<vmem>>, %arg24: memref<1x2xf32, #tpu.memory_space<vmem>>, %arg25: memref<1x1x2xf32, #tpu.memory_space<vmem>>, %arg26: memref<1x1x2xf32, #tpu.memory_space<vmem>>) attributes {dimension_semantics = [#tpu.dimension_semantics<parallel>], iteration_bounds = array<i64: 2>, scalar_prefetch = 0 : i64, scratch_operands = 0 : i64, tpu.core_type = #tpu.core_type<tc>, window_params = [{transform_indices = @transform_0, window_bounds = array<i64: 1, 16, 1>}, {transform_indices = @transform_1, window_bounds = array<i64: 1, 16, 1>}, {transform_indices = @transform_2, window_bounds = array<i64: 1, 1, 16>}, {pipeline_mode = #tpu.pipeline_mode<synchronous>, transform_indices = @transform_3, window_bounds = array<i64: 128, 32>}, {transform_indices = @transform_4, window_bounds = array<i64: 16, 32>}, {pipeline_mode = #tpu.pipeline_mode<synchronous>, transform_indices = @transform_5, window_bounds = array<i64: 2, 32>}, {pipeline_mode = #tpu.pipeline_mode<synchronous>, transform_indices = @transform_6, window_bounds = array<i64: 1, 32>}, {pipeline_mode = #tpu.pipeline_mode<synchronous>, transform_indices = @transform_7, window_bounds = array<i64: 1, 32>}, {pipeline_mode = #tpu.pipeline_mode<synchronous>, transform_indices = @transform_8, window_bounds = array<i64: 2, 32, 96>}, {pipeline_mode = #tpu.pipeline_mode<synchronous>, transform_indices = @transform_9, window_bounds = array<i64: 2, 1, 96>}, {pipeline_mode = #tpu.pipeline_mode<synchronous>, transform_indices = @transform_10, window_bounds = array<i64: 2, 2, 16, 32>}, {pipeline_mode = #tpu.pipeline_mode<synchronous>, transform_indices = @transform_11, window_bounds = array<i64: 2, 1, 32>}, {pipeline_mode = #tpu.pipeline_mode<synchronous>, transform_indices = @transform_12, window_bounds = array<i64: 2, 1, 32>}, {pipeline_mode = #tpu.pipeline_mode<synchronous>, transform_indices = @transform_13, window_bounds = array<i64: 2, 1, 32>}, {pipeline_mode = #tpu.pipeline_mode<synchronous>, transform_indices = @transform_14, window_bounds = array<i64: 2, 32, 64>}, {pipeline_mode = #tpu.pipeline_mode<synchronous>, transform_indices = @transform_15, window_bounds = array<i64: 2, 1, 64>}, {pipeline_mode = #tpu.pipeline_mode<synchronous>, transform_indices = @transform_16, window_bounds = array<i64: 2, 64, 32>}, {pipeline_mode = #tpu.pipeline_mode<synchronous>, transform_indices = @transform_17, window_bounds = array<i64: 2, 1, 32>}, {pipeline_mode = #tpu.pipeline_mode<synchronous>, transform_indices = @transform_18, window_bounds = array<i64: 2, 1, 32>}, {pipeline_mode = #tpu.pipeline_mode<synchronous>, transform_indices = @transform_19, window_bounds = array<i64: 2, 1, 32>}, {pipeline_mode = #tpu.pipeline_mode<synchronous>, transform_indices = @transform_20, window_bounds = array<i64: 32, 32>}, {pipeline_mode = #tpu.pipeline_mode<synchronous>, transform_indices = @transform_21, window_bounds = array<i64: 1, 32>}, {pipeline_mode = #tpu.pipeline_mode<synchronous>, transform_indices = @transform_22, window_bounds = array<i64: 32, 2>}, {pipeline_mode = #tpu.pipeline_mode<synchronous>, transform_indices = @transform_23, window_bounds = array<i64: 1, 2>}, {transform_indices = @transform_24, window_bounds = array<i64: 1, 1, 2>}, {transform_indices = @transform_25, window_bounds = array<i64: 1, 1, 2>}]} {
    %c0 = arith.constant 0 : index
    %c0_0 = arith.constant 0 : index
    %c0_1 = arith.constant 0 : index
    %0 = vector.load %arg1[%c0, %c0_0, %c0_1] : memref<1x16x1xi32, #tpu.memory_space<vmem>>, vector<1x16x1xi32>
    %1 = vector.shape_cast %0 : vector<1x16x1xi32> to vector<16x1xi32>
    %c0_2 = arith.constant 0 : index
    %c0_3 = arith.constant 0 : index
    %c0_4 = arith.constant 0 : index
    %2 = vector.load %arg2[%c0_2, %c0_3, %c0_4] : memref<1x16x1xi32, #tpu.memory_space<vmem>>, vector<1x16x1xi32>
    %3 = vector.shape_cast %2 : vector<1x16x1xi32> to vector<16x1xi32>
    %4 = arith.sitofp %3 : vector<16x1xi32> to vector<16x1xf32>
    %5 = tpu.iota {dimensions = array<i32: 1>} : vector<16x128xi32>
    %6 = vector.broadcast %1 : vector<16x1xi32> to vector<16x128xi32>
    %7 = arith.cmpi eq, %5, %6 : vector<16x128xi32>
    %8 = arith.extui %7 : vector<16x128xi1> to vector<16x128xi32>
    %9 = arith.sitofp %8 : vector<16x128xi32> to vector<16x128xf32>
    %c0_5 = arith.constant 0 : index
    %c0_6 = arith.constant 0 : index
    %10 = vector.load %arg4[%c0_5, %c0_6] : memref<128x32xf32, #tpu.memory_space<vmem>>, vector<128x32xf32>
    %cst = arith.constant dense<0.000000e+00> : vector<16x32xf32>
    %11 = tpu.matmul %9, %10, %cst {dimension_numbers = #tpu.dot_dimension_numbers<[1], [0], [0], [1], [0, 0, 1, 1], [], []>} : vector<16x128xf32>, vector<128x32xf32>, vector<16x32xf32> -> vector<16x32xf32>
    %cst_7 = arith.constant 1.000000e+00 : f32
    %12 = vector.broadcast %cst_7 : f32 to vector<16x1xf32>
    %13 = arith.subf %12, %4 : vector<16x1xf32>
    %c0_8 = arith.constant 0 : index
    %c0_9 = arith.constant 0 : index
    %14 = vector.load %arg6[%c0_8, %c0_9] : memref<2x32xf32, #tpu.memory_space<vmem>>, vector<1x32xf32>
    %15 = vector.broadcast %13 : vector<16x1xf32> to vector<16x32xf32>
    %16 = vector.broadcast %14 : vector<1x32xf32> to vector<16x32xf32>
    %17 = arith.mulf %15, %16 : vector<16x32xf32>
    %c1 = arith.constant 1 : index
    %c0_10 = arith.constant 0 : index
    %18 = vector.load %arg6[%c1, %c0_10] : memref<2x32xf32, #tpu.memory_space<vmem>>, vector<1x32xf32>
    %19 = vector.broadcast %4 : vector<16x1xf32> to vector<16x32xf32>
    %20 = vector.broadcast %18 : vector<1x32xf32> to vector<16x32xf32>
    %21 = arith.mulf %19, %20 : vector<16x32xf32>
    %22 = arith.addf %17, %21 : vector<16x32xf32>
    %c0_11 = arith.constant 0 : index
    %c0_12 = arith.constant 0 : index
    %23 = vector.load %arg5[%c0_11, %c0_12] : memref<16x32xf32, #tpu.memory_space<vmem>>, vector<16x32xf32>
    %24 = arith.addf %11, %23 : vector<16x32xf32>
    %25 = arith.addf %24, %22 : vector<16x32xf32>
    %c0_13 = arith.constant 0 : index
    %c0_14 = arith.constant 0 : index
    %26 = vector.load %arg7[%c0_13, %c0_14] : memref<1x32xf32, #tpu.memory_space<vmem>>, vector<1x32xf32>
    %c0_15 = arith.constant 0 : index
    %c0_16 = arith.constant 0 : index
    %27 = vector.load %arg8[%c0_15, %c0_16] : memref<1x32xf32, #tpu.memory_space<vmem>>, vector<1x32xf32>
    %cst_17 = arith.constant dense<0.000000e+00> : vector<16xf32>
    %28 = vector.multi_reduction <add>, %25, %cst_17 [1] : vector<16x32xf32> to vector<16xf32>
    %29 = vector.shape_cast %28 : vector<16xf32> to vector<16x1xf32>
    %cst_18 = arith.constant 3.200000e+01 : f32
    %30 = vector.broadcast %cst_18 : f32 to vector<16x1xf32>
    %31 = arith.divf %29, %30 : vector<16x1xf32>
    %32 = vector.broadcast %31 : vector<16x1xf32> to vector<16x32xf32>
    %33 = arith.subf %25, %32 : vector<16x32xf32>
    %34 = arith.mulf %33, %33 : vector<16x32xf32>
    %cst_19 = arith.constant dense<0.000000e+00> : vector<16xf32>
    %35 = vector.multi_reduction <add>, %34, %cst_19 [1] : vector<16x32xf32> to vector<16xf32>
    %36 = vector.shape_cast %35 : vector<16xf32> to vector<16x1xf32>
    %cst_20 = arith.constant 3.200000e+01 : f32
    %37 = vector.broadcast %cst_20 : f32 to vector<16x1xf32>
    %38 = arith.divf %36, %37 : vector<16x1xf32>
    %39 = vector.broadcast %31 : vector<16x1xf32> to vector<16x32xf32>
    %40 = arith.subf %25, %39 : vector<16x32xf32>
    %cst_21 = arith.constant 9.99999996E-13 : f32
    %41 = vector.broadcast %cst_21 : f32 to vector<16x1xf32>
    %42 = arith.addf %38, %41 : vector<16x1xf32>
    %43 = math.rsqrt %42 : vector<16x1xf32>
    %44 = vector.broadcast %43 : vector<16x1xf32> to vector<16x32xf32>
    %45 = arith.mulf %40, %44 : vector<16x32xf32>
    %46 = vector.broadcast %26 : vector<1x32xf32> to vector<16x32xf32>
    %47 = arith.mulf %45, %46 : vector<16x32xf32>
    %48 = vector.broadcast %27 : vector<1x32xf32> to vector<16x32xf32>
    %49 = arith.addf %47, %48 : vector<16x32xf32>
    %c0_22 = arith.constant 0 : index
    %c0_23 = arith.constant 0 : index
    %c0_24 = arith.constant 0 : index
    %50 = vector.load %arg3[%c0_22, %c0_23, %c0_24] : memref<1x1x16xf32, #tpu.memory_space<vmem>>, vector<1x1x16xf32>
    %51 = vector.shape_cast %50 : vector<1x1x16xf32> to vector<1x16xf32>
    %cst_25 = arith.constant 1.000000e+00 : f32
    %52 = vector.broadcast %cst_25 : f32 to vector<1x16xf32>
    %53 = arith.subf %52, %51 : vector<1x16xf32>
    %cst_26 = arith.constant -1.000000e+09 : f32
    %54 = vector.broadcast %cst_26 : f32 to vector<1x16xf32>
    %55 = arith.mulf %53, %54 : vector<1x16xf32>
    %56 = vector.shape_cast %55 : vector<1x16xf32> to vector<1x16xf32>
    %57 = vector.broadcast %56 : vector<1x16xf32> to vector<16x16xf32>
    %c0_27 = arith.constant 0 : index
    %c0_28 = arith.constant 0 : index
    %c0_29 = arith.constant 0 : index
    %58 = vector.load %arg9[%c0_27, %c0_28, %c0_29] : memref<2x32x96xf32, #tpu.memory_space<vmem>>, vector<1x32x96xf32>
    %59 = vector.shape_cast %58 : vector<1x32x96xf32> to vector<32x96xf32>
    %cst_30 = arith.constant dense<0.000000e+00> : vector<16x96xf32>
    %60 = tpu.matmul %49, %59, %cst_30 {dimension_numbers = #tpu.dot_dimension_numbers<[1], [0], [0], [1], [0, 0, 1, 1], [], []>} : vector<16x32xf32>, vector<32x96xf32>, vector<16x96xf32> -> vector<16x96xf32>
    %c0_31 = arith.constant 0 : index
    %c0_32 = arith.constant 0 : index
    %c0_33 = arith.constant 0 : index
    %61 = vector.load %arg10[%c0_31, %c0_32, %c0_33] : memref<2x1x96xf32, #tpu.memory_space<vmem>>, vector<1x1x96xf32>
    %62 = vector.shape_cast %61 : vector<1x1x96xf32> to vector<1x96xf32>
    %63 = vector.broadcast %62 : vector<1x96xf32> to vector<16x96xf32>
    %64 = arith.addf %60, %63 : vector<16x96xf32>
    %65 = vector.extract_strided_slice %64 {offsets = [0, 0], sizes = [16, 16], strides = [1, 1]} : vector<16x96xf32> to vector<16x16xf32>
    %66 = vector.extract_strided_slice %64 {offsets = [0, 32], sizes = [16, 16], strides = [1, 1]} : vector<16x96xf32> to vector<16x16xf32>
    %67 = vector.extract_strided_slice %64 {offsets = [0, 64], sizes = [16, 16], strides = [1, 1]} : vector<16x96xf32> to vector<16x16xf32>
    %cst_34 = arith.constant dense<0.000000e+00> : vector<16x16xf32>
    %68 = tpu.matmul %65, %66, %cst_34 {dimension_numbers = #tpu.dot_dimension_numbers<[1], [1], [0], [0], [0, 0, 1, 0], [], []>} : vector<16x16xf32>, vector<16x16xf32>, vector<16x16xf32> -> vector<16x16xf32>
    %69 = arith.addf %68, %57 : vector<16x16xf32>
    %cst_35 = arith.constant dense<0xFF800000> : vector<16xf32>
    %70 = vector.multi_reduction <maximumf>, %69, %cst_35 [1] : vector<16x16xf32> to vector<16xf32>
    %71 = vector.shape_cast %70 : vector<16xf32> to vector<16x1xf32>
    %72 = vector.broadcast %71 : vector<16x1xf32> to vector<16x16xf32>
    %73 = arith.subf %69, %72 : vector<16x16xf32>
    %74 = math.exp %73 : vector<16x16xf32>
    %cst_36 = arith.constant dense<0.000000e+00> : vector<16xf32>
    %75 = vector.multi_reduction <add>, %74, %cst_36 [1] : vector<16x16xf32> to vector<16xf32>
    %76 = vector.shape_cast %75 : vector<16xf32> to vector<16x1xf32>
    %77 = tpu.reciprocal %76 {approx = true} : vector<16x1xf32> -> vector<16x1xf32>
    %78 = vector.broadcast %77 : vector<16x1xf32> to vector<16x16xf32>
    %79 = arith.mulf %74, %78 : vector<16x16xf32>
    %cst_37 = arith.constant dense<0.000000e+00> : vector<16x16xf32>
    %80 = tpu.matmul %79, %67, %cst_37 {dimension_numbers = #tpu.dot_dimension_numbers<[1], [0], [0], [1], [0, 0, 1, 1], [], []>} : vector<16x16xf32>, vector<16x16xf32>, vector<16x16xf32> -> vector<16x16xf32>
    %c0_38 = arith.constant 0 : index
    %c0_39 = arith.constant 0 : index
    %c0_40 = arith.constant 0 : index
    %c0_41 = arith.constant 0 : index
    %81 = vector.load %arg11[%c0_38, %c0_39, %c0_40, %c0_41] : memref<2x2x16x32xf32, #tpu.memory_space<vmem>>, vector<1x1x16x32xf32>
    %82 = vector.shape_cast %81 : vector<1x1x16x32xf32> to vector<16x32xf32>
    %cst_42 = arith.constant dense<0.000000e+00> : vector<16x32xf32>
    %83 = tpu.matmul %80, %82, %cst_42 {dimension_numbers = #tpu.dot_dimension_numbers<[1], [0], [0], [1], [0, 0, 1, 1], [], []>} : vector<16x16xf32>, vector<16x32xf32>, vector<16x32xf32> -> vector<16x32xf32>
    %84 = vector.extract_strided_slice %64 {offsets = [0, 16], sizes = [16, 16], strides = [1, 1]} : vector<16x96xf32> to vector<16x16xf32>
    %85 = vector.extract_strided_slice %64 {offsets = [0, 48], sizes = [16, 16], strides = [1, 1]} : vector<16x96xf32> to vector<16x16xf32>
    %86 = vector.extract_strided_slice %64 {offsets = [0, 80], sizes = [16, 16], strides = [1, 1]} : vector<16x96xf32> to vector<16x16xf32>
    %cst_43 = arith.constant dense<0.000000e+00> : vector<16x16xf32>
    %87 = tpu.matmul %84, %85, %cst_43 {dimension_numbers = #tpu.dot_dimension_numbers<[1], [1], [0], [0], [0, 0, 1, 0], [], []>} : vector<16x16xf32>, vector<16x16xf32>, vector<16x16xf32> -> vector<16x16xf32>
    %88 = arith.addf %87, %57 : vector<16x16xf32>
    %cst_44 = arith.constant dense<0xFF800000> : vector<16xf32>
    %89 = vector.multi_reduction <maximumf>, %88, %cst_44 [1] : vector<16x16xf32> to vector<16xf32>
    %90 = vector.shape_cast %89 : vector<16xf32> to vector<16x1xf32>
    %91 = vector.broadcast %90 : vector<16x1xf32> to vector<16x16xf32>
    %92 = arith.subf %88, %91 : vector<16x16xf32>
    %93 = math.exp %92 : vector<16x16xf32>
    %cst_45 = arith.constant dense<0.000000e+00> : vector<16xf32>
    %94 = vector.multi_reduction <add>, %93, %cst_45 [1] : vector<16x16xf32> to vector<16xf32>
    %95 = vector.shape_cast %94 : vector<16xf32> to vector<16x1xf32>
    %96 = tpu.reciprocal %95 {approx = true} : vector<16x1xf32> -> vector<16x1xf32>
    %97 = vector.broadcast %96 : vector<16x1xf32> to vector<16x16xf32>
    %98 = arith.mulf %93, %97 : vector<16x16xf32>
    %cst_46 = arith.constant dense<0.000000e+00> : vector<16x16xf32>
    %99 = tpu.matmul %98, %86, %cst_46 {dimension_numbers = #tpu.dot_dimension_numbers<[1], [0], [0], [1], [0, 0, 1, 1], [], []>} : vector<16x16xf32>, vector<16x16xf32>, vector<16x16xf32> -> vector<16x16xf32>
    %c0_47 = arith.constant 0 : index
    %c1_48 = arith.constant 1 : index
    %c0_49 = arith.constant 0 : index
    %c0_50 = arith.constant 0 : index
    %100 = vector.load %arg11[%c0_47, %c1_48, %c0_49, %c0_50] : memref<2x2x16x32xf32, #tpu.memory_space<vmem>>, vector<1x1x16x32xf32>
    %101 = vector.shape_cast %100 : vector<1x1x16x32xf32> to vector<16x32xf32>
    %cst_51 = arith.constant dense<0.000000e+00> : vector<16x32xf32>
    %102 = tpu.matmul %99, %101, %cst_51 {dimension_numbers = #tpu.dot_dimension_numbers<[1], [0], [0], [1], [0, 0, 1, 1], [], []>} : vector<16x16xf32>, vector<16x32xf32>, vector<16x32xf32> -> vector<16x32xf32>
    %103 = arith.addf %83, %102 : vector<16x32xf32>
    %c0_52 = arith.constant 0 : index
    %c0_53 = arith.constant 0 : index
    %c0_54 = arith.constant 0 : index
    %104 = vector.load %arg12[%c0_52, %c0_53, %c0_54] : memref<2x1x32xf32, #tpu.memory_space<vmem>>, vector<1x1x32xf32>
    %105 = vector.shape_cast %104 : vector<1x1x32xf32> to vector<1x32xf32>
    %106 = vector.broadcast %105 : vector<1x32xf32> to vector<16x32xf32>
    %107 = arith.addf %103, %106 : vector<16x32xf32>
    %108 = arith.addf %49, %107 : vector<16x32xf32>
    %c0_55 = arith.constant 0 : index
    %c0_56 = arith.constant 0 : index
    %c0_57 = arith.constant 0 : index
    %109 = vector.load %arg13[%c0_55, %c0_56, %c0_57] : memref<2x1x32xf32, #tpu.memory_space<vmem>>, vector<1x1x32xf32>
    %110 = vector.shape_cast %109 : vector<1x1x32xf32> to vector<1x32xf32>
    %c0_58 = arith.constant 0 : index
    %c0_59 = arith.constant 0 : index
    %c0_60 = arith.constant 0 : index
    %111 = vector.load %arg14[%c0_58, %c0_59, %c0_60] : memref<2x1x32xf32, #tpu.memory_space<vmem>>, vector<1x1x32xf32>
    %112 = vector.shape_cast %111 : vector<1x1x32xf32> to vector<1x32xf32>
    %cst_61 = arith.constant dense<0.000000e+00> : vector<16xf32>
    %113 = vector.multi_reduction <add>, %108, %cst_61 [1] : vector<16x32xf32> to vector<16xf32>
    %114 = vector.shape_cast %113 : vector<16xf32> to vector<16x1xf32>
    %cst_62 = arith.constant 3.200000e+01 : f32
    %115 = vector.broadcast %cst_62 : f32 to vector<16x1xf32>
    %116 = arith.divf %114, %115 : vector<16x1xf32>
    %117 = vector.broadcast %116 : vector<16x1xf32> to vector<16x32xf32>
    %118 = arith.subf %108, %117 : vector<16x32xf32>
    %119 = arith.mulf %118, %118 : vector<16x32xf32>
    %cst_63 = arith.constant dense<0.000000e+00> : vector<16xf32>
    %120 = vector.multi_reduction <add>, %119, %cst_63 [1] : vector<16x32xf32> to vector<16xf32>
    %121 = vector.shape_cast %120 : vector<16xf32> to vector<16x1xf32>
    %cst_64 = arith.constant 3.200000e+01 : f32
    %122 = vector.broadcast %cst_64 : f32 to vector<16x1xf32>
    %123 = arith.divf %121, %122 : vector<16x1xf32>
    %124 = vector.broadcast %116 : vector<16x1xf32> to vector<16x32xf32>
    %125 = arith.subf %108, %124 : vector<16x32xf32>
    %cst_65 = arith.constant 9.99999996E-13 : f32
    %126 = vector.broadcast %cst_65 : f32 to vector<16x1xf32>
    %127 = arith.addf %123, %126 : vector<16x1xf32>
    %128 = math.rsqrt %127 : vector<16x1xf32>
    %129 = vector.broadcast %128 : vector<16x1xf32> to vector<16x32xf32>
    %130 = arith.mulf %125, %129 : vector<16x32xf32>
    %131 = vector.broadcast %110 : vector<1x32xf32> to vector<16x32xf32>
    %132 = arith.mulf %130, %131 : vector<16x32xf32>
    %133 = vector.broadcast %112 : vector<1x32xf32> to vector<16x32xf32>
    %134 = arith.addf %132, %133 : vector<16x32xf32>
    %c0_66 = arith.constant 0 : index
    %c0_67 = arith.constant 0 : index
    %c0_68 = arith.constant 0 : index
    %135 = vector.load %arg15[%c0_66, %c0_67, %c0_68] : memref<2x32x64xf32, #tpu.memory_space<vmem>>, vector<1x32x64xf32>
    %136 = vector.shape_cast %135 : vector<1x32x64xf32> to vector<32x64xf32>
    %cst_69 = arith.constant dense<0.000000e+00> : vector<16x64xf32>
    %137 = tpu.matmul %134, %136, %cst_69 {dimension_numbers = #tpu.dot_dimension_numbers<[1], [0], [0], [1], [0, 0, 1, 1], [], []>} : vector<16x32xf32>, vector<32x64xf32>, vector<16x64xf32> -> vector<16x64xf32>
    %c0_70 = arith.constant 0 : index
    %c0_71 = arith.constant 0 : index
    %c0_72 = arith.constant 0 : index
    %138 = vector.load %arg16[%c0_70, %c0_71, %c0_72] : memref<2x1x64xf32, #tpu.memory_space<vmem>>, vector<1x1x64xf32>
    %139 = vector.shape_cast %138 : vector<1x1x64xf32> to vector<1x64xf32>
    %140 = vector.broadcast %139 : vector<1x64xf32> to vector<16x64xf32>
    %141 = arith.addf %137, %140 : vector<16x64xf32>
    %142 = arith.mulf %141, %141 : vector<16x64xf32>
    %143 = arith.mulf %141, %142 : vector<16x64xf32>
    %cst_73 = arith.constant 4.471500e-02 : f32
    %144 = vector.broadcast %cst_73 : f32 to vector<16x64xf32>
    %145 = arith.mulf %144, %143 : vector<16x64xf32>
    %146 = arith.addf %141, %145 : vector<16x64xf32>
    %cst_74 = arith.constant 0.797884583 : f32
    %147 = vector.broadcast %cst_74 : f32 to vector<16x64xf32>
    %148 = arith.mulf %147, %146 : vector<16x64xf32>
    %149 = math.tanh %148 : vector<16x64xf32>
    %cst_75 = arith.constant 1.000000e+00 : f32
    %150 = vector.broadcast %cst_75 : f32 to vector<16x64xf32>
    %151 = arith.addf %150, %149 : vector<16x64xf32>
    %cst_76 = arith.constant 5.000000e-01 : f32
    %152 = vector.broadcast %cst_76 : f32 to vector<16x64xf32>
    %153 = arith.mulf %152, %151 : vector<16x64xf32>
    %154 = arith.mulf %141, %153 : vector<16x64xf32>
    %c0_77 = arith.constant 0 : index
    %c0_78 = arith.constant 0 : index
    %c0_79 = arith.constant 0 : index
    %155 = vector.load %arg17[%c0_77, %c0_78, %c0_79] : memref<2x64x32xf32, #tpu.memory_space<vmem>>, vector<1x64x32xf32>
    %156 = vector.shape_cast %155 : vector<1x64x32xf32> to vector<64x32xf32>
    %cst_80 = arith.constant dense<0.000000e+00> : vector<16x32xf32>
    %157 = tpu.matmul %154, %156, %cst_80 {dimension_numbers = #tpu.dot_dimension_numbers<[1], [0], [0], [1], [0, 0, 1, 1], [], []>} : vector<16x64xf32>, vector<64x32xf32>, vector<16x32xf32> -> vector<16x32xf32>
    %c0_81 = arith.constant 0 : index
    %c0_82 = arith.constant 0 : index
    %c0_83 = arith.constant 0 : index
    %158 = vector.load %arg18[%c0_81, %c0_82, %c0_83] : memref<2x1x32xf32, #tpu.memory_space<vmem>>, vector<1x1x32xf32>
    %159 = vector.shape_cast %158 : vector<1x1x32xf32> to vector<1x32xf32>
    %160 = vector.broadcast %159 : vector<1x32xf32> to vector<16x32xf32>
    %161 = arith.addf %157, %160 : vector<16x32xf32>
    %162 = arith.addf %134, %161 : vector<16x32xf32>
    %c0_84 = arith.constant 0 : index
    %c0_85 = arith.constant 0 : index
    %c0_86 = arith.constant 0 : index
    %163 = vector.load %arg19[%c0_84, %c0_85, %c0_86] : memref<2x1x32xf32, #tpu.memory_space<vmem>>, vector<1x1x32xf32>
    %164 = vector.shape_cast %163 : vector<1x1x32xf32> to vector<1x32xf32>
    %c0_87 = arith.constant 0 : index
    %c0_88 = arith.constant 0 : index
    %c0_89 = arith.constant 0 : index
    %165 = vector.load %arg20[%c0_87, %c0_88, %c0_89] : memref<2x1x32xf32, #tpu.memory_space<vmem>>, vector<1x1x32xf32>
    %166 = vector.shape_cast %165 : vector<1x1x32xf32> to vector<1x32xf32>
    %cst_90 = arith.constant dense<0.000000e+00> : vector<16xf32>
    %167 = vector.multi_reduction <add>, %162, %cst_90 [1] : vector<16x32xf32> to vector<16xf32>
    %168 = vector.shape_cast %167 : vector<16xf32> to vector<16x1xf32>
    %cst_91 = arith.constant 3.200000e+01 : f32
    %169 = vector.broadcast %cst_91 : f32 to vector<16x1xf32>
    %170 = arith.divf %168, %169 : vector<16x1xf32>
    %171 = vector.broadcast %170 : vector<16x1xf32> to vector<16x32xf32>
    %172 = arith.subf %162, %171 : vector<16x32xf32>
    %173 = arith.mulf %172, %172 : vector<16x32xf32>
    %cst_92 = arith.constant dense<0.000000e+00> : vector<16xf32>
    %174 = vector.multi_reduction <add>, %173, %cst_92 [1] : vector<16x32xf32> to vector<16xf32>
    %175 = vector.shape_cast %174 : vector<16xf32> to vector<16x1xf32>
    %cst_93 = arith.constant 3.200000e+01 : f32
    %176 = vector.broadcast %cst_93 : f32 to vector<16x1xf32>
    %177 = arith.divf %175, %176 : vector<16x1xf32>
    %178 = vector.broadcast %170 : vector<16x1xf32> to vector<16x32xf32>
    %179 = arith.subf %162, %178 : vector<16x32xf32>
    %cst_94 = arith.constant 9.99999996E-13 : f32
    %180 = vector.broadcast %cst_94 : f32 to vector<16x1xf32>
    %181 = arith.addf %177, %180 : vector<16x1xf32>
    %182 = math.rsqrt %181 : vector<16x1xf32>
    %183 = vector.broadcast %182 : vector<16x1xf32> to vector<16x32xf32>
    %184 = arith.mulf %179, %183 : vector<16x32xf32>
    %185 = vector.broadcast %164 : vector<1x32xf32> to vector<16x32xf32>
    %186 = arith.mulf %184, %185 : vector<16x32xf32>
    %187 = vector.broadcast %166 : vector<1x32xf32> to vector<16x32xf32>
    %188 = arith.addf %186, %187 : vector<16x32xf32>
    %c1_95 = arith.constant 1 : index
    %c0_96 = arith.constant 0 : index
    %c0_97 = arith.constant 0 : index
    %189 = vector.load %arg9[%c1_95, %c0_96, %c0_97] : memref<2x32x96xf32, #tpu.memory_space<vmem>>, vector<1x32x96xf32>
    %190 = vector.shape_cast %189 : vector<1x32x96xf32> to vector<32x96xf32>
    %cst_98 = arith.constant dense<0.000000e+00> : vector<16x96xf32>
    %191 = tpu.matmul %188, %190, %cst_98 {dimension_numbers = #tpu.dot_dimension_numbers<[1], [0], [0], [1], [0, 0, 1, 1], [], []>} : vector<16x32xf32>, vector<32x96xf32>, vector<16x96xf32> -> vector<16x96xf32>
    %c1_99 = arith.constant 1 : index
    %c0_100 = arith.constant 0 : index
    %c0_101 = arith.constant 0 : index
    %192 = vector.load %arg10[%c1_99, %c0_100, %c0_101] : memref<2x1x96xf32, #tpu.memory_space<vmem>>, vector<1x1x96xf32>
    %193 = vector.shape_cast %192 : vector<1x1x96xf32> to vector<1x96xf32>
    %194 = vector.broadcast %193 : vector<1x96xf32> to vector<16x96xf32>
    %195 = arith.addf %191, %194 : vector<16x96xf32>
    %196 = vector.extract_strided_slice %195 {offsets = [0, 0], sizes = [16, 16], strides = [1, 1]} : vector<16x96xf32> to vector<16x16xf32>
    %197 = vector.extract_strided_slice %195 {offsets = [0, 32], sizes = [16, 16], strides = [1, 1]} : vector<16x96xf32> to vector<16x16xf32>
    %198 = vector.extract_strided_slice %195 {offsets = [0, 64], sizes = [16, 16], strides = [1, 1]} : vector<16x96xf32> to vector<16x16xf32>
    %cst_102 = arith.constant dense<0.000000e+00> : vector<16x16xf32>
    %199 = tpu.matmul %196, %197, %cst_102 {dimension_numbers = #tpu.dot_dimension_numbers<[1], [1], [0], [0], [0, 0, 1, 0], [], []>} : vector<16x16xf32>, vector<16x16xf32>, vector<16x16xf32> -> vector<16x16xf32>
    %200 = arith.addf %199, %57 : vector<16x16xf32>
    %cst_103 = arith.constant dense<0xFF800000> : vector<16xf32>
    %201 = vector.multi_reduction <maximumf>, %200, %cst_103 [1] : vector<16x16xf32> to vector<16xf32>
    %202 = vector.shape_cast %201 : vector<16xf32> to vector<16x1xf32>
    %203 = vector.broadcast %202 : vector<16x1xf32> to vector<16x16xf32>
    %204 = arith.subf %200, %203 : vector<16x16xf32>
    %205 = math.exp %204 : vector<16x16xf32>
    %cst_104 = arith.constant dense<0.000000e+00> : vector<16xf32>
    %206 = vector.multi_reduction <add>, %205, %cst_104 [1] : vector<16x16xf32> to vector<16xf32>
    %207 = vector.shape_cast %206 : vector<16xf32> to vector<16x1xf32>
    %208 = tpu.reciprocal %207 {approx = true} : vector<16x1xf32> -> vector<16x1xf32>
    %209 = vector.broadcast %208 : vector<16x1xf32> to vector<16x16xf32>
    %210 = arith.mulf %205, %209 : vector<16x16xf32>
    %cst_105 = arith.constant dense<0.000000e+00> : vector<16x16xf32>
    %211 = tpu.matmul %210, %198, %cst_105 {dimension_numbers = #tpu.dot_dimension_numbers<[1], [0], [0], [1], [0, 0, 1, 1], [], []>} : vector<16x16xf32>, vector<16x16xf32>, vector<16x16xf32> -> vector<16x16xf32>
    %c1_106 = arith.constant 1 : index
    %c0_107 = arith.constant 0 : index
    %c0_108 = arith.constant 0 : index
    %c0_109 = arith.constant 0 : index
    %212 = vector.load %arg11[%c1_106, %c0_107, %c0_108, %c0_109] : memref<2x2x16x32xf32, #tpu.memory_space<vmem>>, vector<1x1x16x32xf32>
    %213 = vector.shape_cast %212 : vector<1x1x16x32xf32> to vector<16x32xf32>
    %cst_110 = arith.constant dense<0.000000e+00> : vector<16x32xf32>
    %214 = tpu.matmul %211, %213, %cst_110 {dimension_numbers = #tpu.dot_dimension_numbers<[1], [0], [0], [1], [0, 0, 1, 1], [], []>} : vector<16x16xf32>, vector<16x32xf32>, vector<16x32xf32> -> vector<16x32xf32>
    %215 = vector.extract_strided_slice %195 {offsets = [0, 16], sizes = [16, 16], strides = [1, 1]} : vector<16x96xf32> to vector<16x16xf32>
    %216 = vector.extract_strided_slice %195 {offsets = [0, 48], sizes = [16, 16], strides = [1, 1]} : vector<16x96xf32> to vector<16x16xf32>
    %217 = vector.extract_strided_slice %195 {offsets = [0, 80], sizes = [16, 16], strides = [1, 1]} : vector<16x96xf32> to vector<16x16xf32>
    %cst_111 = arith.constant dense<0.000000e+00> : vector<16x16xf32>
    %218 = tpu.matmul %215, %216, %cst_111 {dimension_numbers = #tpu.dot_dimension_numbers<[1], [1], [0], [0], [0, 0, 1, 0], [], []>} : vector<16x16xf32>, vector<16x16xf32>, vector<16x16xf32> -> vector<16x16xf32>
    %219 = arith.addf %218, %57 : vector<16x16xf32>
    %cst_112 = arith.constant dense<0xFF800000> : vector<16xf32>
    %220 = vector.multi_reduction <maximumf>, %219, %cst_112 [1] : vector<16x16xf32> to vector<16xf32>
    %221 = vector.shape_cast %220 : vector<16xf32> to vector<16x1xf32>
    %222 = vector.broadcast %221 : vector<16x1xf32> to vector<16x16xf32>
    %223 = arith.subf %219, %222 : vector<16x16xf32>
    %224 = math.exp %223 : vector<16x16xf32>
    %cst_113 = arith.constant dense<0.000000e+00> : vector<16xf32>
    %225 = vector.multi_reduction <add>, %224, %cst_113 [1] : vector<16x16xf32> to vector<16xf32>
    %226 = vector.shape_cast %225 : vector<16xf32> to vector<16x1xf32>
    %227 = tpu.reciprocal %226 {approx = true} : vector<16x1xf32> -> vector<16x1xf32>
    %228 = vector.broadcast %227 : vector<16x1xf32> to vector<16x16xf32>
    %229 = arith.mulf %224, %228 : vector<16x16xf32>
    %cst_114 = arith.constant dense<0.000000e+00> : vector<16x16xf32>
    %230 = tpu.matmul %229, %217, %cst_114 {dimension_numbers = #tpu.dot_dimension_numbers<[1], [0], [0], [1], [0, 0, 1, 1], [], []>} : vector<16x16xf32>, vector<16x16xf32>, vector<16x16xf32> -> vector<16x16xf32>
    %c1_115 = arith.constant 1 : index
    %c1_116 = arith.constant 1 : index
    %c0_117 = arith.constant 0 : index
    %c0_118 = arith.constant 0 : index
    %231 = vector.load %arg11[%c1_115, %c1_116, %c0_117, %c0_118] : memref<2x2x16x32xf32, #tpu.memory_space<vmem>>, vector<1x1x16x32xf32>
    %232 = vector.shape_cast %231 : vector<1x1x16x32xf32> to vector<16x32xf32>
    %cst_119 = arith.constant dense<0.000000e+00> : vector<16x32xf32>
    %233 = tpu.matmul %230, %232, %cst_119 {dimension_numbers = #tpu.dot_dimension_numbers<[1], [0], [0], [1], [0, 0, 1, 1], [], []>} : vector<16x16xf32>, vector<16x32xf32>, vector<16x32xf32> -> vector<16x32xf32>
    %234 = arith.addf %214, %233 : vector<16x32xf32>
    %c1_120 = arith.constant 1 : index
    %c0_121 = arith.constant 0 : index
    %c0_122 = arith.constant 0 : index
    %235 = vector.load %arg12[%c1_120, %c0_121, %c0_122] : memref<2x1x32xf32, #tpu.memory_space<vmem>>, vector<1x1x32xf32>
    %236 = vector.shape_cast %235 : vector<1x1x32xf32> to vector<1x32xf32>
    %237 = vector.broadcast %236 : vector<1x32xf32> to vector<16x32xf32>
    %238 = arith.addf %234, %237 : vector<16x32xf32>
    %239 = arith.addf %188, %238 : vector<16x32xf32>
    %c1_123 = arith.constant 1 : index
    %c0_124 = arith.constant 0 : index
    %c0_125 = arith.constant 0 : index
    %240 = vector.load %arg13[%c1_123, %c0_124, %c0_125] : memref<2x1x32xf32, #tpu.memory_space<vmem>>, vector<1x1x32xf32>
    %241 = vector.shape_cast %240 : vector<1x1x32xf32> to vector<1x32xf32>
    %c1_126 = arith.constant 1 : index
    %c0_127 = arith.constant 0 : index
    %c0_128 = arith.constant 0 : index
    %242 = vector.load %arg14[%c1_126, %c0_127, %c0_128] : memref<2x1x32xf32, #tpu.memory_space<vmem>>, vector<1x1x32xf32>
    %243 = vector.shape_cast %242 : vector<1x1x32xf32> to vector<1x32xf32>
    %cst_129 = arith.constant dense<0.000000e+00> : vector<16xf32>
    %244 = vector.multi_reduction <add>, %239, %cst_129 [1] : vector<16x32xf32> to vector<16xf32>
    %245 = vector.shape_cast %244 : vector<16xf32> to vector<16x1xf32>
    %cst_130 = arith.constant 3.200000e+01 : f32
    %246 = vector.broadcast %cst_130 : f32 to vector<16x1xf32>
    %247 = arith.divf %245, %246 : vector<16x1xf32>
    %248 = vector.broadcast %247 : vector<16x1xf32> to vector<16x32xf32>
    %249 = arith.subf %239, %248 : vector<16x32xf32>
    %250 = arith.mulf %249, %249 : vector<16x32xf32>
    %cst_131 = arith.constant dense<0.000000e+00> : vector<16xf32>
    %251 = vector.multi_reduction <add>, %250, %cst_131 [1] : vector<16x32xf32> to vector<16xf32>
    %252 = vector.shape_cast %251 : vector<16xf32> to vector<16x1xf32>
    %cst_132 = arith.constant 3.200000e+01 : f32
    %253 = vector.broadcast %cst_132 : f32 to vector<16x1xf32>
    %254 = arith.divf %252, %253 : vector<16x1xf32>
    %255 = vector.broadcast %247 : vector<16x1xf32> to vector<16x32xf32>
    %256 = arith.subf %239, %255 : vector<16x32xf32>
    %cst_133 = arith.constant 9.99999996E-13 : f32
    %257 = vector.broadcast %cst_133 : f32 to vector<16x1xf32>
    %258 = arith.addf %254, %257 : vector<16x1xf32>
    %259 = math.rsqrt %258 : vector<16x1xf32>
    %260 = vector.broadcast %259 : vector<16x1xf32> to vector<16x32xf32>
    %261 = arith.mulf %256, %260 : vector<16x32xf32>
    %262 = vector.broadcast %241 : vector<1x32xf32> to vector<16x32xf32>
    %263 = arith.mulf %261, %262 : vector<16x32xf32>
    %264 = vector.broadcast %243 : vector<1x32xf32> to vector<16x32xf32>
    %265 = arith.addf %263, %264 : vector<16x32xf32>
    %c1_134 = arith.constant 1 : index
    %c0_135 = arith.constant 0 : index
    %c0_136 = arith.constant 0 : index
    %266 = vector.load %arg15[%c1_134, %c0_135, %c0_136] : memref<2x32x64xf32, #tpu.memory_space<vmem>>, vector<1x32x64xf32>
    %267 = vector.shape_cast %266 : vector<1x32x64xf32> to vector<32x64xf32>
    %cst_137 = arith.constant dense<0.000000e+00> : vector<16x64xf32>
    %268 = tpu.matmul %265, %267, %cst_137 {dimension_numbers = #tpu.dot_dimension_numbers<[1], [0], [0], [1], [0, 0, 1, 1], [], []>} : vector<16x32xf32>, vector<32x64xf32>, vector<16x64xf32> -> vector<16x64xf32>
    %c1_138 = arith.constant 1 : index
    %c0_139 = arith.constant 0 : index
    %c0_140 = arith.constant 0 : index
    %269 = vector.load %arg16[%c1_138, %c0_139, %c0_140] : memref<2x1x64xf32, #tpu.memory_space<vmem>>, vector<1x1x64xf32>
    %270 = vector.shape_cast %269 : vector<1x1x64xf32> to vector<1x64xf32>
    %271 = vector.broadcast %270 : vector<1x64xf32> to vector<16x64xf32>
    %272 = arith.addf %268, %271 : vector<16x64xf32>
    %273 = arith.mulf %272, %272 : vector<16x64xf32>
    %274 = arith.mulf %272, %273 : vector<16x64xf32>
    %cst_141 = arith.constant 4.471500e-02 : f32
    %275 = vector.broadcast %cst_141 : f32 to vector<16x64xf32>
    %276 = arith.mulf %275, %274 : vector<16x64xf32>
    %277 = arith.addf %272, %276 : vector<16x64xf32>
    %cst_142 = arith.constant 0.797884583 : f32
    %278 = vector.broadcast %cst_142 : f32 to vector<16x64xf32>
    %279 = arith.mulf %278, %277 : vector<16x64xf32>
    %280 = math.tanh %279 : vector<16x64xf32>
    %cst_143 = arith.constant 1.000000e+00 : f32
    %281 = vector.broadcast %cst_143 : f32 to vector<16x64xf32>
    %282 = arith.addf %281, %280 : vector<16x64xf32>
    %cst_144 = arith.constant 5.000000e-01 : f32
    %283 = vector.broadcast %cst_144 : f32 to vector<16x64xf32>
    %284 = arith.mulf %283, %282 : vector<16x64xf32>
    %285 = arith.mulf %272, %284 : vector<16x64xf32>
    %c1_145 = arith.constant 1 : index
    %c0_146 = arith.constant 0 : index
    %c0_147 = arith.constant 0 : index
    %286 = vector.load %arg17[%c1_145, %c0_146, %c0_147] : memref<2x64x32xf32, #tpu.memory_space<vmem>>, vector<1x64x32xf32>
    %287 = vector.shape_cast %286 : vector<1x64x32xf32> to vector<64x32xf32>
    %cst_148 = arith.constant dense<0.000000e+00> : vector<16x32xf32>
    %288 = tpu.matmul %285, %287, %cst_148 {dimension_numbers = #tpu.dot_dimension_numbers<[1], [0], [0], [1], [0, 0, 1, 1], [], []>} : vector<16x64xf32>, vector<64x32xf32>, vector<16x32xf32> -> vector<16x32xf32>
    %c1_149 = arith.constant 1 : index
    %c0_150 = arith.constant 0 : index
    %c0_151 = arith.constant 0 : index
    %289 = vector.load %arg18[%c1_149, %c0_150, %c0_151] : memref<2x1x32xf32, #tpu.memory_space<vmem>>, vector<1x1x32xf32>
    %290 = vector.shape_cast %289 : vector<1x1x32xf32> to vector<1x32xf32>
    %291 = vector.broadcast %290 : vector<1x32xf32> to vector<16x32xf32>
    %292 = arith.addf %288, %291 : vector<16x32xf32>
    %293 = arith.addf %265, %292 : vector<16x32xf32>
    %c1_152 = arith.constant 1 : index
    %c0_153 = arith.constant 0 : index
    %c0_154 = arith.constant 0 : index
    %294 = vector.load %arg19[%c1_152, %c0_153, %c0_154] : memref<2x1x32xf32, #tpu.memory_space<vmem>>, vector<1x1x32xf32>
    %295 = vector.shape_cast %294 : vector<1x1x32xf32> to vector<1x32xf32>
    %c1_155 = arith.constant 1 : index
    %c0_156 = arith.constant 0 : index
    %c0_157 = arith.constant 0 : index
    %296 = vector.load %arg20[%c1_155, %c0_156, %c0_157] : memref<2x1x32xf32, #tpu.memory_space<vmem>>, vector<1x1x32xf32>
    %297 = vector.shape_cast %296 : vector<1x1x32xf32> to vector<1x32xf32>
    %cst_158 = arith.constant dense<0.000000e+00> : vector<16xf32>
    %298 = vector.multi_reduction <add>, %293, %cst_158 [1] : vector<16x32xf32> to vector<16xf32>
    %299 = vector.shape_cast %298 : vector<16xf32> to vector<16x1xf32>
    %cst_159 = arith.constant 3.200000e+01 : f32
    %300 = vector.broadcast %cst_159 : f32 to vector<16x1xf32>
    %301 = arith.divf %299, %300 : vector<16x1xf32>
    %302 = vector.broadcast %301 : vector<16x1xf32> to vector<16x32xf32>
    %303 = arith.subf %293, %302 : vector<16x32xf32>
    %304 = arith.mulf %303, %303 : vector<16x32xf32>
    %cst_160 = arith.constant dense<0.000000e+00> : vector<16xf32>
    %305 = vector.multi_reduction <add>, %304, %cst_160 [1] : vector<16x32xf32> to vector<16xf32>
    %306 = vector.shape_cast %305 : vector<16xf32> to vector<16x1xf32>
    %cst_161 = arith.constant 3.200000e+01 : f32
    %307 = vector.broadcast %cst_161 : f32 to vector<16x1xf32>
    %308 = arith.divf %306, %307 : vector<16x1xf32>
    %309 = vector.broadcast %301 : vector<16x1xf32> to vector<16x32xf32>
    %310 = arith.subf %293, %309 : vector<16x32xf32>
    %cst_162 = arith.constant 9.99999996E-13 : f32
    %311 = vector.broadcast %cst_162 : f32 to vector<16x1xf32>
    %312 = arith.addf %308, %311 : vector<16x1xf32>
    %313 = math.rsqrt %312 : vector<16x1xf32>
    %314 = vector.broadcast %313 : vector<16x1xf32> to vector<16x32xf32>
    %315 = arith.mulf %310, %314 : vector<16x32xf32>
    %316 = vector.broadcast %295 : vector<1x32xf32> to vector<16x32xf32>
    %317 = arith.mulf %315, %316 : vector<16x32xf32>
    %318 = vector.broadcast %297 : vector<1x32xf32> to vector<16x32xf32>
    %319 = arith.addf %317, %318 : vector<16x32xf32>
    %320 = vector.extract_strided_slice %319 {offsets = [0, 0], sizes = [1, 32], strides = [1, 1]} : vector<16x32xf32> to vector<1x32xf32>
    %c0_163 = arith.constant 0 : index
    %c0_164 = arith.constant 0 : index
    %321 = vector.load %arg21[%c0_163, %c0_164] : memref<32x32xf32, #tpu.memory_space<vmem>>, vector<32x32xf32>
    %cst_165 = arith.constant dense<0.000000e+00> : vector<1x32xf32>
    %322 = tpu.matmul %320, %321, %cst_165 {dimension_numbers = #tpu.dot_dimension_numbers<[1], [0], [0], [1], [0, 0, 1, 1], [], []>} : vector<1x32xf32>, vector<32x32xf32>, vector<1x32xf32> -> vector<1x32xf32>
    %c0_166 = arith.constant 0 : index
    %c0_167 = arith.constant 0 : index
    %323 = vector.load %arg22[%c0_166, %c0_167] : memref<1x32xf32, #tpu.memory_space<vmem>>, vector<1x32xf32>
    %324 = arith.addf %322, %323 : vector<1x32xf32>
    %325 = math.tanh %324 : vector<1x32xf32>
    %c0_168 = arith.constant 0 : index
    %c0_169 = arith.constant 0 : index
    %326 = vector.load %arg23[%c0_168, %c0_169] : memref<32x2xf32, #tpu.memory_space<vmem>>, vector<32x2xf32>
    %cst_170 = arith.constant dense<0.000000e+00> : vector<1x2xf32>
    %327 = tpu.matmul %325, %326, %cst_170 {dimension_numbers = #tpu.dot_dimension_numbers<[1], [0], [0], [1], [0, 0, 1, 1], [], []>} : vector<1x32xf32>, vector<32x2xf32>, vector<1x2xf32> -> vector<1x2xf32>
    %c0_171 = arith.constant 0 : index
    %c0_172 = arith.constant 0 : index
    %328 = vector.load %arg24[%c0_171, %c0_172] : memref<1x2xf32, #tpu.memory_space<vmem>>, vector<1x2xf32>
    %329 = arith.addf %327, %328 : vector<1x2xf32>
    %cst_173 = arith.constant dense<0xFF800000> : vector<1xf32>
    %330 = vector.multi_reduction <maximumf>, %329, %cst_173 [1] : vector<1x2xf32> to vector<1xf32>
    %331 = vector.shape_cast %330 : vector<1xf32> to vector<1x1xf32>
    %332 = vector.broadcast %331 : vector<1x1xf32> to vector<1x2xf32>
    %333 = arith.subf %329, %332 : vector<1x2xf32>
    %334 = math.exp %333 : vector<1x2xf32>
    %cst_174 = arith.constant dense<0.000000e+00> : vector<1xf32>
    %335 = vector.multi_reduction <add>, %334, %cst_174 [1] : vector<1x2xf32> to vector<1xf32>
    %336 = vector.shape_cast %335 : vector<1xf32> to vector<1x1xf32>
    %337 = vector.broadcast %336 : vector<1x1xf32> to vector<1x2xf32>
    %338 = arith.divf %334, %337 : vector<1x2xf32>
    %c0_175 = arith.constant 0 : index
    %c0_176 = arith.constant 0 : index
    %c0_177 = arith.constant 0 : index
    %339 = vector.load %arg25[%c0_175, %c0_176, %c0_177] : memref<1x1x2xf32, #tpu.memory_space<vmem>>, vector<1x1x2xf32>
    %340 = vector.shape_cast %339 : vector<1x1x2xf32> to vector<1x2xf32>
    %341 = vector.shape_cast %329 : vector<1x2xf32> to vector<1x1x2xf32>
    tpu.vector_store %arg25[%c0_175, %c0_176, %c0_177], %341 {strides = array<i32>} : memref<1x1x2xf32, #tpu.memory_space<vmem>>, vector<1x1x2xf32>,
    %c0_178 = arith.constant 0 : index
    %c0_179 = arith.constant 0 : index
    %c0_180 = arith.constant 0 : index
    %342 = vector.load %arg26[%c0_178, %c0_179, %c0_180] : memref<1x1x2xf32, #tpu.memory_space<vmem>>, vector<1x1x2xf32>
    %343 = vector.shape_cast %342 : vector<1x1x2xf32> to vector<1x2xf32>
    %344 = vector.shape_cast %338 : vector<1x2xf32> to vector<1x1x2xf32>
    tpu.vector_store %arg26[%c0_178, %c0_179, %c0_180], %344 {strides = array<i32>} : memref<1x1x2xf32, #tpu.memory_space<vmem>>, vector<1x1x2xf32>,
    return
  }
  func.func @transform_0(%arg0: i32) -> (i32, i32, i32) {
    %c0_i32 = arith.constant 0 : i32
    %c0_i32_0 = arith.constant 0 : i32
    %c0_i32_1 = arith.constant 0 : i32
    return %arg0, %c0_i32, %c0_i32_0 : i32, i32, i32
  }
  func.func @transform_1(%arg0: i32) -> (i32, i32, i32) {
    %c0_i32 = arith.constant 0 : i32
    %c0_i32_0 = arith.constant 0 : i32
    %c0_i32_1 = arith.constant 0 : i32
    return %arg0, %c0_i32, %c0_i32_0 : i32, i32, i32
  }
  func.func @transform_2(%arg0: i32) -> (i32, i32, i32) {
    %c0_i32 = arith.constant 0 : i32
    %c0_i32_0 = arith.constant 0 : i32
    %c0_i32_1 = arith.constant 0 : i32
    return %arg0, %c0_i32, %c0_i32_0 : i32, i32, i32
  }
  func.func @transform_3(%arg0: i32) -> (i32, i32) {
    %c0_i32 = arith.constant 0 : i32
    %c0_i32_0 = arith.constant 0 : i32
    %c0_i32_1 = arith.constant 0 : i32
    return %c0_i32, %c0_i32_0 : i32, i32
  }
  func.func @transform_4(%arg0: i32) -> (i32, i32) {
    %c0_i32 = arith.constant 0 : i32
    %c0_i32_0 = arith.constant 0 : i32
    %c0_i32_1 = arith.constant 0 : i32
    return %c0_i32, %c0_i32_0 : i32, i32
  }
  func.func @transform_5(%arg0: i32) -> (i32, i32) {
    %c0_i32 = arith.constant 0 : i32
    %c0_i32_0 = arith.constant 0 : i32
    %c0_i32_1 = arith.constant 0 : i32
    return %c0_i32, %c0_i32_0 : i32, i32
  }
  func.func @transform_6(%arg0: i32) -> (i32, i32) {
    %c0_i32 = arith.constant 0 : i32
    %c0_i32_0 = arith.constant 0 : i32
    %c0_i32_1 = arith.constant 0 : i32
    return %c0_i32, %c0_i32_0 : i32, i32
  }
  func.func @transform_7(%arg0: i32) -> (i32, i32) {
    %c0_i32 = arith.constant 0 : i32
    %c0_i32_0 = arith.constant 0 : i32
    %c0_i32_1 = arith.constant 0 : i32
    return %c0_i32, %c0_i32_0 : i32, i32
  }
  func.func @transform_8(%arg0: i32) -> (i32, i32, i32) {
    %c0_i32 = arith.constant 0 : i32
    %c0_i32_0 = arith.constant 0 : i32
    %c0_i32_1 = arith.constant 0 : i32
    %c0_i32_2 = arith.constant 0 : i32
    return %c0_i32, %c0_i32_0, %c0_i32_1 : i32, i32, i32
  }
  func.func @transform_9(%arg0: i32) -> (i32, i32, i32) {
    %c0_i32 = arith.constant 0 : i32
    %c0_i32_0 = arith.constant 0 : i32
    %c0_i32_1 = arith.constant 0 : i32
    %c0_i32_2 = arith.constant 0 : i32
    return %c0_i32, %c0_i32_0, %c0_i32_1 : i32, i32, i32
  }
  func.func @transform_10(%arg0: i32) -> (i32, i32, i32, i32) {
    %c0_i32 = arith.constant 0 : i32
    %c0_i32_0 = arith.constant 0 : i32
    %c0_i32_1 = arith.constant 0 : i32
    %c0_i32_2 = arith.constant 0 : i32
    %c0_i32_3 = arith.constant 0 : i32
    return %c0_i32, %c0_i32_0, %c0_i32_1, %c0_i32_2 : i32, i32, i32, i32
  }
  func.func @transform_11(%arg0: i32) -> (i32, i32, i32) {
    %c0_i32 = arith.constant 0 : i32
    %c0_i32_0 = arith.constant 0 : i32
    %c0_i32_1 = arith.constant 0 : i32
    %c0_i32_2 = arith.constant 0 : i32
    return %c0_i32, %c0_i32_0, %c0_i32_1 : i32, i32, i32
  }
  func.func @transform_12(%arg0: i32) -> (i32, i32, i32) {
    %c0_i32 = arith.constant 0 : i32
    %c0_i32_0 = arith.constant 0 : i32
    %c0_i32_1 = arith.constant 0 : i32
    %c0_i32_2 = arith.constant 0 : i32
    return %c0_i32, %c0_i32_0, %c0_i32_1 : i32, i32, i32
  }
  func.func @transform_13(%arg0: i32) -> (i32, i32, i32) {
    %c0_i32 = arith.constant 0 : i32
    %c0_i32_0 = arith.constant 0 : i32
    %c0_i32_1 = arith.constant 0 : i32
    %c0_i32_2 = arith.constant 0 : i32
    return %c0_i32, %c0_i32_0, %c0_i32_1 : i32, i32, i32
  }
  func.func @transform_14(%arg0: i32) -> (i32, i32, i32) {
    %c0_i32 = arith.constant 0 : i32
    %c0_i32_0 = arith.constant 0 : i32
    %c0_i32_1 = arith.constant 0 : i32
    %c0_i32_2 = arith.constant 0 : i32
    return %c0_i32, %c0_i32_0, %c0_i32_1 : i32, i32, i32
  }
  func.func @transform_15(%arg0: i32) -> (i32, i32, i32) {
    %c0_i32 = arith.constant 0 : i32
    %c0_i32_0 = arith.constant 0 : i32
    %c0_i32_1 = arith.constant 0 : i32
    %c0_i32_2 = arith.constant 0 : i32
    return %c0_i32, %c0_i32_0, %c0_i32_1 : i32, i32, i32
  }
  func.func @transform_16(%arg0: i32) -> (i32, i32, i32) {
    %c0_i32 = arith.constant 0 : i32
    %c0_i32_0 = arith.constant 0 : i32
    %c0_i32_1 = arith.constant 0 : i32
    %c0_i32_2 = arith.constant 0 : i32
    return %c0_i32, %c0_i32_0, %c0_i32_1 : i32, i32, i32
  }
  func.func @transform_17(%arg0: i32) -> (i32, i32, i32) {
    %c0_i32 = arith.constant 0 : i32
    %c0_i32_0 = arith.constant 0 : i32
    %c0_i32_1 = arith.constant 0 : i32
    %c0_i32_2 = arith.constant 0 : i32
    return %c0_i32, %c0_i32_0, %c0_i32_1 : i32, i32, i32
  }
  func.func @transform_18(%arg0: i32) -> (i32, i32, i32) {
    %c0_i32 = arith.constant 0 : i32
    %c0_i32_0 = arith.constant 0 : i32
    %c0_i32_1 = arith.constant 0 : i32
    %c0_i32_2 = arith.constant 0 : i32
    return %c0_i32, %c0_i32_0, %c0_i32_1 : i32, i32, i32
  }
  func.func @transform_19(%arg0: i32) -> (i32, i32, i32) {
    %c0_i32 = arith.constant 0 : i32
    %c0_i32_0 = arith.constant 0 : i32
    %c0_i32_1 = arith.constant 0 : i32
    %c0_i32_2 = arith.constant 0 : i32
    return %c0_i32, %c0_i32_0, %c0_i32_1 : i32, i32, i32
  }
  func.func @transform_20(%arg0: i32) -> (i32, i32) {
    %c0_i32 = arith.constant 0 : i32
    %c0_i32_0 = arith.constant 0 : i32
    %c0_i32_1 = arith.constant 0 : i32
    return %c0_i32, %c0_i32_0 : i32, i32
  }
  func.func @transform_21(%arg0: i32) -> (i32, i32) {
    %c0_i32 = arith.constant 0 : i32
    %c0_i32_0 = arith.constant 0 : i32
    %c0_i32_1 = arith.constant 0 : i32
    return %c0_i32, %c0_i32_0 : i32, i32
  }
  func.func @transform_22(%arg0: i32) -> (i32, i32) {
    %c0_i32 = arith.constant 0 : i32
    %c0_i32_0 = arith.constant 0 : i32
    %c0_i32_1 = arith.constant 0 : i32
    return %c0_i32, %c0_i32_0 : i32, i32
  }
  func.func @transform_23(%arg0: i32) -> (i32, i32) {
    %c0_i32 = arith.constant 0 : i32
    %c0_i32_0 = arith.constant 0 : i32
    %c0_i32_1 = arith.constant 0 : i32
    return %c0_i32, %c0_i32_0 : i32, i32
  }
  func.func @transform_24(%arg0: i32) -> (i32, i32, i32) {
    %c0_i32 = arith.constant 0 : i32
    %c0_i32_0 = arith.constant 0 : i32
    %c0_i32_1 = arith.constant 0 : i32
    return %arg0, %c0_i32, %c0_i32_0 : i32, i32, i32
  }
  func.func @transform_25(%arg0: i32) -> (i32, i32, i32) {
    %c0_i32 = arith.constant 0 : i32
    %c0_i32_0 = arith.constant 0 : i32
    %c0_i32_1 = arith.constant 0 : i32
    return %arg0, %c0_i32, %c0_i32_0 : i32, i32, i32
  }
}

</mosaic_0001>

<bundles_post_ra>
// kernel: model_forward.1
= control target key start
LH: loop header
LB: loop body
LE: loop exit
PB: predicated region body
PF: predicated region fallthrough
CT: control target
= control target key end

     0   :  { %s4613_s0 = inlined_call_operand.vmem [shape: s32[2,16,1], index: 0, kind: input, shape index: {}]   ;;  %s4614_s1 = inlined_call_operand.vmem [shape: s32[2,16,1], index: 1, kind: input, shape index: {}]   ;;  %s4615_s2 = inlined_call_operand.vmem [shape: f32[2,1,16], index: 2, kind: input, shape index: {}]   ;;  %s4616_s3 = inlined_call_operand.vmem [shape: f32[128,32], index: 3, kind: input, shape index: {}]   ;;  %s4617_s4 = inlined_call_operand.vmem [shape: f32[64,32], index: 4, kind: input, shape index: {}]   ;;  %s4618_s5 = inlined_call_operand.vmem [shape: f32[2,32], index: 5, kind: input, shape index: {}]   ;;  %s4619_s6 = inlined_call_operand.vmem [shape: f32[1,32], index: 6, kind: input, shape index: {}]   ;;  %s4620_s7 = inlined_call_operand.vmem [shape: f32[1,32], index: 7, kind: input, shape index: {}]   ;;  %s4621_s8 = inlined_call_operand.vmem [shape: f32[2,32,96], index: 8, kind: input, shape index: {}]   ;;  %s4622_s9 = inlined_call_operand.vmem [shape: f32[2,1,96], index: 9, kind: input, shape index: {}]   ;;  %s4623_s10 = inlined_call_operand.vmem [shape: f32[2,2,16,32], index: 10, kind: input, shape index: {}]   ;;  %s4624_s11 = inlined_call_operand.vmem [shape: f32[2,1,32], index: 11, kind: input, shape index: {}]   ;;  %s4625_s12 = inlined_call_operand.vmem [shape: f32[2,1,32], index: 12, kind: input, shape index: {}]   ;;  %s4626_s13 = inlined_call_operand.vmem [shape: f32[2,1,32], index: 13, kind: input, shape index: {}]   ;;  %s4627_s14 = inlined_call_operand.vmem [shape: f32[2,32,64], index: 14, kind: input, shape index: {}]   ;;  %s4628_s15 = inlined_call_operand.vmem [shape: f32[2,1,64], index: 15, kind: input, shape index: {}]   ;;  %s4629_s16 = inlined_call_operand.vmem [shape: f32[2,64,32], index: 16, kind: input, shape index: {}]   ;;  %s4630_s17 = inlined_call_operand.vmem [shape: f32[2,1,32], index: 17, kind: input, shape index: {}]   ;;  %s4631_s18 = inlined_call_operand.vmem [shape: f32[2,1,32], index: 18, kind: input, shape index: {}]   ;;  %s4632_s19 = inlined_call_operand.vmem [shape: f32[2,1,32], index: 19, kind: input, shape index: {}]   ;;  %s4633_s20 = inlined_call_operand.vmem [shape: f32[32,32], index: 20, kind: input, shape index: {}]   ;;  %s4634_s21 = inlined_call_operand.vmem [shape: f32[1,32], index: 21, kind: input, shape index: {}]   ;;  %s4635_s22 = inlined_call_operand.vmem [shape: f32[32,2], index: 22, kind: input, shape index: {}]   ;;  %s4636_s23 = inlined_call_operand.vmem [shape: f32[1,2], index: 23, kind: input, shape index: {}]   ;;  %s4637_s24 = inlined_call_operand.hbm [shape: f32[2,1,2], index: 24, kind: output, shape index: {0}]   ;;  %s4638_s25 = inlined_call_operand.hbm [shape: f32[2,1,2], index: 25, kind: output, shape index: {1}]  }
   0x1   :  { %4660 = sst [smem:[#allocation16_spill]] %s4613_s0 }
   0x2   :  { %4661 = sst [smem:[#allocation17_spill]] %s4614_s1 }
   0x3   :  { %4662 = sst [smem:[#allocation18_spill]] %s4615_s2 }
   0x4   :  { %4663 = sst [smem:[#allocation19_spill]] %s4616_s3 }
   0x5   :  { %4664 = sst [smem:[#allocation20_spill]] %s4617_s4 }
   0x6   :  { %4665 = sst [smem:[#allocation21_spill]] %s4618_s5 }
   0x7   :  { %4666 = sst [smem:[#allocation22_spill]] %s4619_s6 }
   0x8   :  { %4667 = sst [smem:[#allocation23_spill]] %s4620_s7 }
   0x9   :  { %4668 = sst [smem:[#allocation24_spill]] %s4621_s8 }
   0xa   :  { %4669 = sst [smem:[#allocation25_spill]] %s4622_s9 }
   0xb   :  { %4670 = sst [smem:[#allocation26_spill]] %s4623_s10 }
   0xc   :  { %4671 = sst [smem:[#allocation27_spill]] %s4634_s21 }
   0xd   :  { %4672 = sst [smem:[#allocation28_spill]] %s4636_s23 }
   0xe   :  { %4673 = sst [smem:[#allocation29_spill]] %s4637_s24 }
   0xf   :  { %4674 = sst [smem:[#allocation30_spill]] %s4638_s25 }
  0x10   :  { %31 = vsyncpa [#allocation3], 0 }
  0x11   :  { %33 = vsyncpa [#allocation3 + $0x1], 0 }
  0x12   :  { %34 = vsyncpa [#allocation5], 0 }
  0x13   :  { %36 = vsyncpa [#allocation5 + $0x1], 0  ;;  %s4053_s29 = smov 0   ;;  %s4055_s2 = smov 0  }
  0x14   :  { %s4057_s6 = smov 0   ;;  %s4059_s30 = smov 0  }
  0x15 LB: > { %4675 = sst [smem:[#allocation8_spill]] %s3898_s29  ;;  %s4074_s7 = sadd.s32 4294967295, %s3910_s30   ;;  %s3910_s30 = sphi %s4059_s30, %s4707_s30   ;;  %s3906_s6 = sphi %s4057_s6, %s4709_s6   ;;  %s3902_s2 = sphi %s4055_s2, %s4711_s2   ;;  %s3898_s29 = sphi %s4053_s29, %s4710_s29  }
  0x16   : > { %4676 = sst [smem:[#allocation9_spill]] %s3906_s6  ;;  %s3244_s3 = sadd.s32 4294967294, %s3910_s30  }
  0x17   : > { %4677 = sst [smem:[#allocation10_spill]] %s3910_s30  ;;  %s4078_s26 = sadd.s32 1, %s3910_s30  }
  0x18   : > { %4678 = sst [smem:[#allocation11_spill]] %s4074_s7  ;;  %s568_s1 = sadd.s32 1, %s3906_s6 }
  0x19   : > { %4679 = sst [smem:[#allocation12_spill]] %s4078_s26  ;;  %s565_s8 = ssub.s32 %s3910_s30, %s4078_s26 }
  0x1a   : > { %p578_p0 = scmp.ne.s32.totalorder %s3906_s6, %s3902_s2  ;;  %p566_p1 = scmp.eq.s32.totalorder %s565_s8, 0 }
  0x1b   : > { %p579_p2 = scmp.eq.s32.totalorder %s4074_s7, 1  ;;  %p584_p3 = scmp.ne.s32.totalorder %s3902_s2, %s3898_s29 }
  0x1c   : > { %p585_p4 = scmp.eq.s32.totalorder %s3244_s3, 1  ;;  %p3247_p7 = scmp.ge.s32.totalorder %s3910_s30, 1 }
  0x1d   : > { %s4089_s27 = scalar_select %p566_p1, %s3906_s6, %s568_s1  }
  0x1e   : > { %p4091_p5 = por %p579_p2, %p578_p0  ;;  %p4095_p6 = por %p585_p4, %p584_p3 }
  0x1f   : > { %4680 = sst [smem:[#allocation13_spill]] %s4089_s27  ;;  %p714_p8 = scmp.lt.s32.totalorder %s3910_s30, 3 }
  0x20   : > { %s4681_s4 = scalar_select %p4091_p5, 1, 0 }
  0x21   : > { %s4683_s28 = scalar_select %p4095_p6, 1, 0 }
  0x22   : > { %4682 = sst [smem:[#allocation14_spill]] %s4681_s4  ;;  %p715_p9 = pnand %p3247_p7, %p714_p8 }
  0x23   : > { %4684 = sst [smem:[#allocation15_spill]] %s4683_s28  ;;  %p793_p10 = scmp.lt.s32.totalorder (!%p715_p9), %s4074_s7, 1 }
  0x24   : > { %718 = sbr.rel (%p715_p9) target bundleno = 6998 (0x1b56), region = 116  ;;  %s4685_s0 = sld [smem:[#allocation19_spill]] (!%p715_p9) }
  0x25   : > { %s4686_s9 = sld [smem:[#allocation18_spill]] (!%p715_p9)  ;;  %s3914_s30 = smov (!%p715_p9), 96  }
  0x26   : > { %s4687_s24 = sld [smem:[#allocation16_spill]] (!%p715_p9)  ;;  %s3917_s27 = smov (!%p715_p9), 112  }
  0x27   : > { %s4690_s3 = sld [smem:[#allocation20_spill]] (!%p715_p9)  ;;  %s3918_s28 = smov (!%p715_p9), 48  }
  0x28   : > { %s4691_s21 = sld [smem:[#allocation24_spill]] (!%p715_p9) }
  0x29   : > { %v3912_v1 = vmov 0   ;;  %s794_s8 = scalar_select %p793_p10, %s4074_s7, 1  ;;  %v812_v4 = vlaneseq  ;;  %v3913_v34 = vmov 1.0   ;;  %vm961_vm2 = vcmask 261120  }
  0x2a   : > { %v841_v0 = vld [vmem:[%s4685_s0 + $0x78] sm:$0xff]  ;;  %3754 = vset.pattern.permute.xlu0 %v3912_v1  ;;  %3755 = vset.pattern.permute.xlu1 %v3912_v1  ;;  %v840_v2 = vld [vmem:[%s4685_s0 + $0x70] sm:$0xff]  ;;  %v839_v3 = vld [vmem:[%s4685_s0 + $0x68] sm:$0xff]  ;;  %s4688_s7 = sld [smem:[#allocation17_spill]]  ;;  %vm1112_vm3 = vcmask 130048   ;;  %vm1852_vm4 = vcmask 523264  }
  0x2b   : > { %3478 = vmatprep.subr.mxu0 %v841_v0  ;;  %s3356_s26 = sshll.u32 %s794_s8, 4  ;;  %s805_s5 = scalar_lea.vmem %s4686_s9, %s794_s8  ;;  %v838_v6 = vld [vmem:[%s4685_s0 + $0x60] sm:$0xff]  ;;  %v1010_v7 = vshrl.u32 %v812_v4, 7  ;;  %v837_v14 = vld [vmem:[%s4685_s0 + $0x58] sm:$0xff]  ;;  %v836_v19 = vld [vmem:[%s4685_s0 + $0x50] sm:$0xff]  ;;  %v813_v32 = vand.u32 127, %v812_v4 }
  0x2c   : > { %3479 = vmatpush3.msra.mxu0 %v841_v0  ;;  %s797_s4 = scalar_lea.vmem %s4687_s24, %s3356_s26  ;;  %v1005_v5 = vld [vmem:[%s805_s5] sm:$0x1]  ;;  %v835_v22 = vld [vmem:[%s4685_s0 + $0x48] sm:$0xff]  ;;  %v833_v24 = vld [vmem:[%s4685_s0 + $0x38] sm:$0xff]  ;;  %s4692_s9 = sld [smem:[#allocation22_spill]]  ;;  %vm3920_vm5 = vmmov 0  }
  0x2d   : > { %3480 = vmatprep.subr.mxu0 %v840_v2  ;;  %v806_v8 = vld [vmem:[%s797_s4] sm:$0xff]  ;;  %v1006_v9 = vsub.f32 1.0, %v1005_v5  ;;  %v1011_v15 = vsub.s32 0, %v1010_v7  ;;  %v807_v17 = vld [vmem:[%s797_s4 + $0x8] sm:$0xff]  ;;  %v832_v25 = vld [vmem:[%s4685_s0 + $0x30] sm:$0xff]  ;;  %s4689_s4 = sld [smem:[#allocation21_spill]] }
  0x2e   : > { %3481 = vmatpush3.msra.mxu0 %v840_v2  ;;  %815 = vperm.xlu0 %3754, %v806_v8   ;;  %v834_v23 = vld [vmem:[%s4685_s0 + $0x40] sm:$0xff]  ;;  %v831_v26 = vld [vmem:[%s4685_s0 + $0x28] sm:$0xff]  ;;  %v829_v28 = vld [vmem:[%s4685_s0 + $0x18] sm:$0xff]  ;;  %s4693_s6 = sld [smem:[#allocation23_spill]]  ;;  %vm3096_vm6 = vcmask 8192  }
  0x2f   : > { %3482 = vmatprep.subr.mxu0 %v839_v3  ;;  %v1007_v16 = vmul.f32 -1e+09, %v1006_v9  ;;  %v830_v27 = vld [vmem:[%s4685_s0 + $0x20] sm:$0xff]  ;;  %v828_v29 = vld [vmem:[%s4685_s0 + $0x10] sm:$0xff]  ;;  %v827_v30 = vld [vmem:[%s4685_s0 + $0x8] sm:$0xff]  ;;  %s4694_s29 = sld [smem:[#allocation25_spill]] }
  0x30   : > { %s802_s23 = scalar_lea.vmem %s4688_s7, %s3356_s26  ;;  %3483 = vmatpush3.msra.mxu0 %v839_v3  ;;  %v826_v31 = vld [vmem:[%s4685_s0] sm:$0xff]  ;;  %v881_v43 = vld [vmem:[%s4690_s3 + $0x8] sm:$0xff]  ;;  %v1017_v4 = vld [vmem:[%s4691_s21 + $0x18] sm:$0xff]  ;;  %s3915_s7 = smov 64  }
  0x31   : > { %v808_v10 = vld [vmem:[%s802_s23] sm:$0xff]  ;;  %v809_v11 = vld [vmem:[%s802_s23 + $0x8] sm:$0xff]  ;;  %3484 = vmatprep.subr.mxu0 %v838_v6  ;;  %v4131_v20 = vrot.slane %v1007_v16, %v1011_v15  ;;  %v1016_v5 = vld [vmem:[%s4691_s21 + $0x10] sm:$0xff]  ;;  %3513 = vmatprep.subr.mxu1 %v1017_v4  ;;  %s3916_s26 = smov 80   ;;  %s4696_s10 = sld [smem:[#allocation26_spill]] }
  0x32   : > { %v810_v12 = vcvt.s32.f32 %v808_v10  ;;  %v811_v13 = vcvt.s32.f32 %v809_v11  ;;  %3485 = vmatpush3.msra.mxu0 %v838_v6  ;;  %818 = vperm.xlu0 %3754, %v807_v17   ;;  %v880_v48 = vld [vmem:[%s4690_s3] sm:$0xff]  ;;  %v1015_v6 = vld [vmem:[%s4691_s21 + $0x8] sm:$0xff]  ;;  %s4699_s8 = sld [smem:[#allocation11_spill]] }
  0x33   : > { %3486 = vmatprep.subr.mxu0 %v837_v14  ;;  %v3255_v38 = vld [vmem:[%s4689_s4 + $0x1] ss:$0 sm:$0xff]  ;;  %v3254_v40 = vld [vmem:[%s4689_s4] ss:$0 sm:$0xff]  ;;  %3514 = vmatpush3.msra.mxu1 %v1017_v4  ;;  %s4701_s24 = sld [smem:[#allocation29_spill]] }
  0x34   : > { %864 = vperm.xlu1 %3755, %v810_v12   ;;  %v842_v18 = vsub.f32 1.0, %v810_v12  ;;  %v843_v21 = vsub.f32 1.0, %v811_v13  ;;  %3487 = vmatpush3.msra.mxu0 %v837_v14  ;;  %v1014_v7 = vld [vmem:[%s4691_s21] sm:$0xff] }
  0x35   : > { %3488 = vmatprep.subr.mxu0 %v836_v19  ;;  %3515 = vmatprep.subr.mxu1 %v1016_v5  ;;  %v3258_v15 = vld [vmem:[%s4692_s9] ss:$0 sm:$0xff]  ;;  %s4695_s23 = smov %s4694_s29 }
  0x36   : > { %3489 = vmatpush3.msra.mxu0 %v836_v19  ;;  %852 = vperm.xlu0 %3754, %v843_v21   ;;  %v3259_v17 = vld [vmem:[%s4693_s6] ss:$0 sm:$0xff] }
  0x37   : > { %3490 = vmatprep.subr.mxu0 %v835_v22  ;;  %3516 = vmatpush3.msra.mxu1 %v1016_v5 }
  0x38   : > { %847 = vperm.xlu1 %3755, %v842_v18   ;;  %3491 = vmatpush3.msra.mxu0 %v835_v22  ;;  %s4659_s5 = sshll.u32 %s4699_s8, 4 }
  0x39   : > { %3492 = vmatprep.subr.mxu0 %v834_v23  ;;  %3517 = vmatprep.subr.mxu1 %v1015_v6  ;;  %s3125_s25 = scalar_lea.hbm %s4701_s24, %s4659_s5 }
  0x3a   : > { %3493 = vmatpush3.msra.mxu0 %v834_v23  ;;  %3518 = vmatpush3.msra.mxu1 %v1015_v6 }
  0x3b   : > { %3494 = vmatprep.subr.mxu0 %v833_v24  ;;  %3519 = vmatprep.subr.mxu1 %v1014_v7 }
  0x3c   : > { %869 = vperm.xlu1 %3755, %v811_v13   ;;  %3495 = vmatpush3.msra.mxu0 %v833_v24 }
  0x3d   : > { %3496 = vmatprep.subr.mxu0 %v832_v25  ;;  %3520 = vmatpush3.msra.mxu1 %v1014_v7 }
  0x3e   : > { %3497 = vmatpush3.msra.mxu0 %v832_v25  ;;  %v3260_v25 = vld [vmem:[%s4694_s29] ss:$0 sm:$0xff]  ;;  %s4697_s29 = sld [smem:[#allocation27_spill]] }
  0x3f   : > { %3498 = vmatprep.subr.mxu0 %v831_v26 }
  0x40   : > { %3499 = vmatpush3.msra.mxu0 %v831_v26 }
  0x41   : > { %3500 = vmatprep.subr.mxu0 %v830_v27 }
  0x42   : > { %3501 = vmatpush3.msra.mxu0 %v830_v27 }
  0x43   : > { %3502 = vmatprep.subr.mxu0 %v829_v28 }
  0x44   : > { %3503 = vmatpush3.msra.mxu0 %v829_v28 }
  0x45   : > { %3504 = vmatprep.subr.mxu0 %v828_v29 }
  0x46   : > { %3505 = vmatpush3.msra.mxu0 %v828_v29 }
  0x47   : > { %3506 = vmatprep.subr.mxu0 %v827_v30 }
  0x48   : > { %3507 = vmatpush3.msra.mxu0 %v827_v30 }
  0x49   : > { %3508 = vmatprep.subr.mxu0 %v826_v31 }
  0x4a   : > { %3509 = vmatpush3.msra.mxu0 %v826_v31 }
  0xa9   : > { %v816_v33 = vpop.permute.xlu0 %815 }
  0xaa   : > { %vm820_vm0 = vcmp.eq.s32.totalorder %v813_v32, %v816_v33 }
  0xab   : > { %3510 = vmatprep.mubr.msk.f32.mxu0 %vm820_vm0, %v3913_v34 }
  0xad   : > { %v819_v35 = vpop.permute.xlu0 %818 }
  0xae   : > { %vm821_vm1 = vcmp.eq.s32.totalorder %v813_v32, %v819_v35 }
  0xaf   : > { %3511 = vmatmul.mubr.msk.f32.vlgmr.msra.gmra.mxu0 %vm821_vm1, %v3913_v34  ;;  %v865_v36 = vpop.permute.xlu1 %864 }
  0xb0   : > { %v876_v44 = vmul.f32 %v3255_v38, %v865_v36 }
  0xb1   : > { %v853_v41 = vpop.permute.xlu0 %852 }
  0xb2   : > { %v860_v46 = vmul.f32 %v3254_v40, %v853_v41 }
  0xb3   : > { %v848_v37 = vpop.permute.xlu1 %847 }
  0xb4   : > { %v859_v45 = vmul.f32 %v3254_v40, %v848_v37 }
  0xb6   : > { %v878_v52 = vadd.f32 %v876_v44, %v859_v45 }
  0xb7   : > { %v870_v39 = vpop.permute.xlu1 %869 }
  0xb8   : > { %v877_v42 = vmul.f32 %v3255_v38, %v870_v39 }
  0xba   : > { %v879_v49 = vadd.f32 %v877_v42, %v860_v46 }
 0x16f   : > { %v3512_v47 = vpop.f32.mrf.mxu0 }
 0x170   : > { %v954_v50 = vadd.f32 %v3512_v47, %v881_v43 }
 0x171   : > { %v948_v51 = vpop.f32.mrf.mxu0 }
 0x172   : > { %v949_v53 = vadd.f32 %v948_v51, %v880_v48  ;;  %v958_v54 = vadd.f32 %v954_v50, %v879_v49 }
 0x174   : > { %v965_v55 = vsel %vm961_vm2, %v958_v54, 0.0  ;;  %v957_v56 = vadd.f32 %v949_v53, %v878_v52 }
 0x175   : > { %966 = vadd.xlane.f32.xlu1 %v965_v55 }
 0x176   : > { %v962_v57 = vsel %vm961_vm2, %v957_v56, 0.0 }
 0x177   : > { %963 = vadd.xlane.f32.xlu0 %v962_v57 }
 0x1fe   : > { %v967_v58 = vpop.xlane.xlu1 %966 }
 0x1ff   : > { %v970_v59 = vmul.f32 0.03125, %v967_v58 }
 0x200   : > { %v964_v60 = vpop.xlane.xlu0 %963 }
 0x201   : > { %v969_v61 = vmul.f32 0.03125, %v964_v60  ;;  %v972_v62 = vsub.f32 %v958_v54, %v970_v59 }
 0x203   : > { %v971_v63 = vsub.f32 %v957_v56, %v969_v61  ;;  %v974_v2 = vmul.f32 %v972_v62, %v972_v62 }
 0x205   : > { %v973_v0 = vmul.f32 %v971_v63, %v971_v63  ;;  %v978_v3 = vsel %vm961_vm2, %v974_v2, 0.0 }
 0x207   : > { %v975_v1 = vsel %vm961_vm2, %v973_v0, 0.0 }
 0x208   : > { %976 = vadd.xlane.f32.xlu0 %v975_v1 }
 0x20c   : > { %979 = vadd.xlane.f32.xlu0 %v978_v3 }
 0x291   : > { %v977_v8 = vpop.xlane.xlu0 %976 }
 0x292   : > { %v981_v9 = vmul.f32 0.03125, %v977_v8 }
 0x294   : > { %v983_v10 = vadd.f32 1e-12, %v981_v9 }
 0x295   : > { %v980_v11 = vpop.xlane.xlu0 %979 }
 0x296   : > { %3756 = vrsqrt.f32 %v983_v10  ;;  %v982_v12 = vmul.f32 0.03125, %v980_v11 }
 0x298   : > { %v984_v13 = vadd.f32 1e-12, %v982_v12 }
 0x29a   : > { %3758 = vrsqrt.f32 %v984_v13 }
 0x2a3   : > { %v3757_v14 = vpop.eup %3756 }
 0x2a4   : > { %v987_v16 = vmul.f32 %v3757_v14, %v971_v63 }
 0x2a6   : > { %v995_v18 = vmul.f32 %v3258_v15, %v987_v16 }
 0x2a7   : > { %v3759_v19 = vpop.eup %3758 }
 0x2a8   : > { %v988_v21 = vmul.f32 %v3759_v19, %v972_v62  ;;  %v4198_v22 = vadd.f32 %v3259_v17, %v995_v18  ;;  %v3276_v18 = vld [vmem:[%s4696_s10 + $0x18] sm:$0xff] }
 0x2aa   : > { %v996_v23 = vmul.f32 %v3258_v15, %v988_v21  ;;  %3521 = vmatprep.mubr.msk.f32.mxu1 %vm961_vm2, %v4198_v22 }
 0x2ac   : > { %v4202_v24 = vadd.f32 %v3259_v17, %v996_v23 }
 0x2ae   : > { %3522 = vmatmul.mubr.msk.f32.vlgmr.msra.gmra.mxu1 %vm961_vm2, %v4202_v24 }
 0x36e   : > { %v3523_v26 = vpop.f32.mrf.mxu1 }
 0x36f   : > { %v4209_v27 = vadd.f32 %v3523_v26, %v3260_v25  ;;  %v3275_v26 = vld [vmem:[%s4696_s10 + $0x10] sm:$0xff] }
 0x370   : > { %v1097_v28 = vpop.f32.mrf.mxu1 }
 0x371   : > { %v4211_v29 = vadd.f32 %v3260_v25, %v1097_v28  ;;  %1110 = vrot.lane.b32.xlu1 %v4209_v27, %s3914_s30 }
 0x373   : > { %1108 = vrot.lane.b32.xlu0 %v4211_v29, %s3914_s30  ;;  %3528 = vmatprep.mubr.msk.f32.mxu1 %vm1112_vm3, %v4211_v29 }
 0x3e3   : > { %v1111_v30 = vpop.permute.xlu1 %1110 }
 0x3e4   : > { %3524 = vmatprep.subr.msk.mxu1 %vm1112_vm3, %v1111_v30 }
 0x3e5   : > { %3525 = vmatpush3.xpose.msk.msra.mxu1 %vm1112_vm3, %v1111_v30  ;;  %v1109_v31 = vpop.permute.xlu0 %1108  ;;  %v1305_v30 = vld [vmem:[%s4696_s10] sm:$0xff] }
 0x3e6   : > { %3526 = vmatprep.subr.msk.mxu1 %vm1112_vm3, %v1109_v31 }
 0x3e9   : > { %3527 = vmatpush3.xpose.msk.msra.mxu1 %vm1112_vm3, %v1109_v31 }
 0x3ec   : > { %3529 = vmatmul.mubr.msk.f32.vlgmr.msra.gmra.mxu1 %vm1112_vm3, %v4209_v27 }
 0x4ac   : > { %v3530_v32 = vpop.f32.mrf.mxu1 }
 0x4ad   : > { %v1193_v33 = vadd.f32 %v3530_v32, %v4131_v20 }
 0x4ae   : > { %v1187_v34 = vpop.f32.mrf.mxu1 }
 0x4af   : > { %v1188_v35 = vadd.f32 %v1187_v34, %v4131_v20  ;;  %v1199_v36 = vsel %vm1112_vm3, %v1193_v33, -inf  ;;  %v3281_v34 = vld [vmem:[%s4624_s11] ss:$0 sm:$0xff] }
 0x4b0   : > { %1200 = vmax.xlane.f32.xlu0 %v1199_v36 }
 0x4b1   : > { %v1196_v37 = vsel %vm1112_vm3, %v1188_v35, -inf }
 0x4b2   : > { %1197 = vmax.xlane.f32.xlu1 %v1196_v37 }
 0x4c3   : > { %1220 = vrot.lane.b32.xlu1 %v4209_v27, %s3915_s7 }
 0x4c7   : > { %1313 = vrot.lane.b32.xlu1 %v4209_v27, %s3916_s26 }
 0x4cb   : > { %1311 = vrot.lane.b32.xlu1 %v4211_v29, %s3916_s26 }
 0x539   : > { %v1201_v38 = vpop.xlane.xlu0 %1200 }
 0x53a   : > { %v1203_v39 = vsub.f32 %v1193_v33, %v1201_v38 }
 0x53b   : > { %v1198_v40 = vpop.xlane.xlu1 %1197 }
 0x53c   : > { %v1206_v41 = vmul.f32 1.442695, %v1203_v39  ;;  %v1202_v42 = vsub.f32 %v1188_v35, %v1198_v40 }
 0x53e   : > { %3760 = vpow2.f32 %v1206_v41  ;;  %v1204_v43 = vmul.f32 1.442695, %v1202_v42 }
 0x53f   : > { %v1221_v44 = vpop.permute.xlu1 %1220 }
 0x540   : > { %3762 = vpow2.f32 %v1204_v43  ;;  %3531 = vmatprep.subr.mxu1 %v1221_v44 }
 0x541   : > { %3532 = vmatpush3.msra.mxu1 %v1221_v44 }
 0x543   : > { %v1314_v49 = vpop.permute.xlu1 %1313 }
 0x547   : > { %v1312_v50 = vpop.permute.xlu1 %1311 }
 0x54b   : > { %v3761_v45 = vpop.eup %3760 }
 0x54c   : > { %v1211_v46 = vsel %vm1112_vm3, %v3761_v45, 0.0 }
 0x54d   : > { %v3763_v47 = vpop.eup %3762  ;;  %1212 = vadd.xlane.f32.xlu0 %v1211_v46 }
 0x54e   : > { %v1208_v48 = vsel %vm1112_vm3, %v3763_v47, 0.0 }
 0x54f   : > { %1209 = vadd.xlane.f32.xlu1 %v1208_v48 }
 0x560   : > { %1309 = vrot.lane.b32.xlu1 %v4209_v27, %s3917_s27 }
 0x563   : > { %1218 = vrot.lane.b32.xlu0 %v4211_v29, %s3915_s7 }
 0x567   : > { %1307 = vrot.lane.b32.xlu0 %v4211_v29, %s3917_s27 }
 0x5d6   : > { %v1213_v51 = vpop.xlane.xlu0 %1212 }
 0x5d7   : > { %3764 = vrcp.f32 %v1213_v51 }
 0x5d8   : > { %v1210_v52 = vpop.xlane.xlu1 %1209 }
 0x5d9   : > { %3766 = vrcp.f32 %v1210_v52 }
 0x5da   : > { %v1219_v53 = vpop.permute.xlu0 %1218 }
 0x5db   : > { %3533 = vmatprep.subr.mxu1 %v1219_v53 }
 0x5dc   : > { %3534 = vmatpush3.msra.mxu1 %v1219_v53  ;;  %v1310_v59 = vpop.permute.xlu1 %1309  ;;  %v1729_v53 = vld [vmem:[%s4627_s14 + $0x10] sm:$0xff] }
 0x5dd   : > { %3538 = vmatprep.subr.msk.mxu1 %vm1112_vm3, %v1314_v49 }
 0x5de   : > { %v1308_v58 = vpop.permute.xlu0 %1307 }
 0x5e4   : > { %v3765_v54 = vpop.eup %3764 }
 0x5e5   : > { %v1217_v57 = vmul.f32 %v3765_v54, %v3761_v45  ;;  %v1728_v54 = vld [vmem:[%s4627_s14 + $0x8] sm:$0xff] }
 0x5e6   : > { %v3767_v55 = vpop.eup %3766 }
 0x5e7   : > { %v1216_v56 = vmul.f32 %v3767_v55, %v3763_v47  ;;  %v1727_v55 = vld [vmem:[%s4627_s14] sm:$0xff] }
 0x5e9   : > { %3535 = vmatprep.mubr.msk.f32.mxu1 %vm1112_vm3, %v1216_v56 }
 0x5ea   : > { %3536 = vmatmul.mubr.msk.f32.vlgmr.msra.gmra.mxu1 %vm1112_vm3, %v1217_v57 }
 0x5eb   : > { %3539 = vmatpush3.xpose.msk.msra.mxu1 %vm1112_vm3, %v1314_v49  ;;  %3542 = vmatprep.mubr.msk.f32.mxu1 %vm1112_vm3, %v1308_v58 }
 0x5ec   : > { %3540 = vmatprep.subr.msk.mxu1 %vm1112_vm3, %v1312_v50 }
 0x5ef   : > { %3541 = vmatpush3.xpose.msk.msra.mxu1 %vm1112_vm3, %v1312_v50 }
 0x5f2   : > { %3543 = vmatmul.mubr.msk.f32.vlgmr.msra.gmra.mxu1 %vm1112_vm3, %v1310_v59 }
 0x6aa   : > { %v3537_v60 = vpop.f32.mrf.mxu1 }
 0x6ac   : > { %v1296_v61 = vpop.f32.mrf.mxu1 }
 0x6b2   : > { %v3544_v62 = vpop.f32.mrf.mxu1 }
 0x6b3   : > { %v1395_v63 = vadd.f32 %v3544_v62, %v4131_v20 }
 0x6b4   : > { %v1389_v0 = vpop.f32.mrf.mxu1 }
 0x6b5   : > { %v1390_v1 = vadd.f32 %v1389_v0, %v4131_v20  ;;  %v1401_v2 = vsel %vm1112_vm3, %v1395_v63, -inf }
 0x6b6   : > { %1402 = vmax.xlane.f32.xlu1 %v1401_v2 }
 0x6b7   : > { %v1398_v3 = vsel %vm1112_vm3, %v1390_v1, -inf }
 0x6b8   : > { %1399 = vmax.xlane.f32.xlu0 %v1398_v3 }
 0x6c7   : > { %1422 = vrot.lane.b32.xlu1 %v4209_v27, %s3918_s28  ;;  %v1306_v27 = vld [vmem:[%s4696_s10 + $0x8] sm:$0xff] }
 0x73f   : > { %v1403_v4 = vpop.xlane.xlu1 %1402 }
 0x740   : > { %v1405_v5 = vsub.f32 %v1395_v63, %v1403_v4  ;;  %v3282_v63 = vld [vmem:[%s4625_s12] ss:$0 sm:$0xff] }
 0x741   : > { %v1400_v6 = vpop.xlane.xlu0 %1399  ;;  %v3283_v4 = vld [vmem:[%s4626_s13] ss:$0 sm:$0xff] }
 0x742   : > { %v1408_v7 = vmul.f32 1.442695, %v1405_v5  ;;  %v1404_v8 = vsub.f32 %v1390_v1, %v1400_v6 }
 0x743   : > { %v1423_v9 = vpop.permute.xlu1 %1422 }
 0x744   : > { %3768 = vpow2.f32 %v1408_v7  ;;  %v1406_v10 = vmul.f32 1.442695, %v1404_v8  ;;  %3545 = vmatprep.subr.mxu1 %v1423_v9  ;;  %v1844_v8 = vld [vmem:[%s4629_s16 + $0x38] sm:$0xff] }
 0x745   : > { %3546 = vmatpush3.msra.mxu1 %v1423_v9  ;;  %v1843_v9 = vld [vmem:[%s4629_s16 + $0x30] sm:$0xff] }
 0x746   : > { %3770 = vpow2.f32 %v1406_v10  ;;  %v1842_v10 = vld [vmem:[%s4629_s16 + $0x28] sm:$0xff] }
 0x751   : > { %v3769_v11 = vpop.eup %3768 }
 0x752   : > { %v1413_v12 = vsel %vm1112_vm3, %v3769_v11, 0.0 }
 0x753   : > { %v3771_v13 = vpop.eup %3770  ;;  %1414 = vadd.xlane.f32.xlu0 %v1413_v12  ;;  %v1840_v12 = vld [vmem:[%s4629_s16 + $0x18] sm:$0xff] }
 0x754   : > { %v1410_v14 = vsel %vm1112_vm3, %v3771_v13, 0.0 }
 0x757   : > { %1411 = vadd.xlane.f32.xlu0 %v1410_v14  ;;  %v1838_v14 = vld [vmem:[%s4629_s16 + $0x8] sm:$0xff] }
 0x76d   : > { %1420 = vrot.lane.b32.xlu0 %v4211_v29, %s3918_s28 }
 0x7dc   : > { %v1415_v15 = vpop.xlane.xlu0 %1414 }
 0x7dd   : > { %3772 = vrcp.f32 %v1415_v15  ;;  %v1837_v15 = vld [vmem:[%s4629_s16] sm:$0xff] }
 0x7e0   : > { %v1412_v16 = vpop.xlane.xlu0 %1411 }
 0x7e1   : > { %3774 = vrcp.f32 %v1412_v16  ;;  %v3284_v16 = vld [vmem:[%s4628_s15] ss:$0 sm:$0xff] }
 0x7e4   : > { %v1421_v17 = vpop.permute.xlu0 %1420 }
 0x7e5   : > { %3547 = vmatprep.subr.mxu1 %v1421_v17 }
 0x7e6   : > { %3548 = vmatpush3.msra.mxu1 %v1421_v17 }
 0x7e7   : > { %3552 = vmatprep.subr.mxu1 %v3276_v18 }
 0x7ea   : > { %v3773_v19 = vpop.eup %3772 }
 0x7eb   : > { %v1419_v25 = vmul.f32 %v3773_v19, %v3769_v11  ;;  %v1841_v11 = vld [vmem:[%s4629_s16 + $0x20] sm:$0xff] }
 0x7ee   : > { %v3775_v21 = vpop.eup %3774 }
 0x7ef   : > { %v1418_v23 = vmul.f32 %v3775_v21, %v3771_v13  ;;  %v1839_v13 = vld [vmem:[%s4629_s16 + $0x10] sm:$0xff] }
 0x7f1   : > { %3549 = vmatprep.mubr.msk.f32.mxu1 %vm1112_vm3, %v1418_v23 }
 0x7f2   : > { %3550 = vmatmul.mubr.msk.f32.vlgmr.msra.gmra.mxu1 %vm1112_vm3, %v1419_v25 }
 0x7f3   : > { %3553 = vmatpush3.msra.mxu1 %v3276_v18 }
 0x7f4   : > { %3554 = vmatprep.subr.mxu1 %v3275_v26 }
 0x7f5   : > { %3555 = vmatpush3.msra.mxu1 %v3275_v26 }
 0x7f6   : > { %3559 = vmatprep.subr.mxu1 %v1306_v27 }
 0x8b2   : > { %v3551_v28 = vpop.f32.mrf.mxu1 }
 0x8b4   : > { %v1498_v29 = vpop.f32.mrf.mxu1 }
 0x8b5   : > { %3556 = vmatprep.mubr.msk.f32.mxu1 %vm1112_vm3, %v1498_v29 }
 0x8b6   : > { %3557 = vmatmul.mubr.msk.f32.vlgmr.msra.gmra.mxu1 %vm1112_vm3, %v3551_v28 }
 0x8b7   : > { %3560 = vmatpush3.msra.mxu1 %v1306_v27  ;;  %3563 = vmatprep.mubr.msk.f32.mxu1 %vm1112_vm3, %v1296_v61 }
 0x8b8   : > { %3561 = vmatprep.subr.mxu1 %v1305_v30 }
 0x8b9   : > { %3562 = vmatpush3.msra.mxu1 %v1305_v30 }
 0x8ba   : > { %3564 = vmatmul.mubr.msk.f32.vlgmr.msra.gmra.mxu1 %vm1112_vm3, %v3537_v60  ;;  %3577 = vmatprep.subr.mxu1 %v1844_v8 }
 0x8bb   : > { %3578 = vmatpush3.msra.mxu1 %v1844_v8 }
 0x8bc   : > { %3579 = vmatprep.subr.mxu1 %v1843_v9 }
 0x8bd   : > { %3580 = vmatpush3.msra.mxu1 %v1843_v9 }
 0x8be   : > { %3581 = vmatprep.subr.mxu1 %v1842_v10 }
 0x8bf   : > { %3582 = vmatpush3.msra.mxu1 %v1842_v10 }
 0x8c0   : > { %3583 = vmatprep.subr.mxu1 %v1841_v11 }
 0x8c1   : > { %3584 = vmatpush3.msra.mxu1 %v1841_v11  ;;  %v3291_v11 = vld [vmem:[%s4632_s19] ss:$0 sm:$0xff] }
 0x8c2   : > { %3585 = vmatprep.subr.mxu1 %v1840_v12 }
 0x8c3   : > { %3586 = vmatpush3.msra.mxu1 %v1840_v12 }
 0x8c4   : > { %3587 = vmatprep.subr.mxu1 %v1839_v13 }
 0x8c5   : > { %3588 = vmatpush3.msra.mxu1 %v1839_v13 }
 0x8c6   : > { %3589 = vmatprep.subr.mxu1 %v1838_v14 }
 0x8c7   : > { %3590 = vmatpush3.msra.mxu1 %v1838_v14 }
 0x8c8   : > { %3591 = vmatprep.subr.mxu1 %v1837_v15 }
 0x8c9   : > { %3592 = vmatpush3.msra.mxu1 %v1837_v15  ;;  %v3297_v15 = vld [vmem:[%s4695_s23 + $0x1] ss:$0 sm:$0xff] }
 0x976   : > { %v3558_v31 = vpop.f32.mrf.mxu1 }
 0x978   : > { %v1582_v32 = vpop.f32.mrf.mxu1 }
 0x97a   : > { %v3565_v33 = vpop.f32.mrf.mxu1 }
 0x97b   : > { %v1669_v35 = vadd.f32 %v3565_v33, %v3558_v31 }
 0x97c   : > { %v1663_v36 = vpop.f32.mrf.mxu1 }
 0x97d   : > { %v1680_v37 = vadd.f32 %v3281_v34, %v1669_v35  ;;  %v1664_v38 = vadd.f32 %v1663_v36, %v1582_v32 }
 0x97f   : > { %v1679_v39 = vadd.f32 %v3281_v34, %v1664_v38  ;;  %v1682_v40 = vadd.f32 %v1680_v37, %v4202_v24 }
 0x981   : > { %v1688_v41 = vsel %vm961_vm2, %v1682_v40, 0.0  ;;  %v1681_v42 = vadd.f32 %v1679_v39, %v4198_v22  ;;  %v1730_v22 = vld [vmem:[%s4627_s14 + $0x18] sm:$0xff] }
 0x982   : > { %1689 = vadd.xlane.f32.xlu0 %v1688_v41  ;;  %3566 = vmatprep.subr.mxu0 %v1730_v22 }
 0x983   : > { %v1685_v43 = vsel %vm961_vm2, %v1681_v42, 0.0  ;;  %3567 = vmatpush3.msra.mxu0 %v1730_v22 }
 0x984   : > { %1686 = vadd.xlane.f32.xlu1 %v1685_v43  ;;  %3568 = vmatprep.subr.mxu0 %v1729_v53 }
 0x985   : > { %3569 = vmatpush3.msra.mxu0 %v1729_v53 }
 0x986   : > { %3570 = vmatprep.subr.mxu0 %v1728_v54 }
 0x987   : > { %3571 = vmatpush3.msra.mxu0 %v1728_v54 }
 0x988   : > { %3572 = vmatprep.subr.mxu0 %v1727_v55 }
 0x989   : > { %3573 = vmatpush3.msra.mxu0 %v1727_v55 }
 0xa0b   : > { %v1690_v44 = vpop.xlane.xlu0 %1689 }
 0xa0c   : > { %v1692_v45 = vmul.f32 0.03125, %v1690_v44 }
 0xa0d   : > { %v1687_v46 = vpop.xlane.xlu1 %1686 }
 0xa0e   : > { %v1694_v47 = vsub.f32 %v1682_v40, %v1692_v45  ;;  %v1691_v48 = vmul.f32 0.03125, %v1687_v46 }
 0xa10   : > { %v1693_v49 = vsub.f32 %v1681_v42, %v1691_v48  ;;  %v1696_v50 = vmul.f32 %v1694_v47, %v1694_v47  ;;  %v3287_v42 = vld [vmem:[%s4630_s17] ss:$0 sm:$0xff] }
 0xa12   : > { %v1700_v51 = vsel %vm961_vm2, %v1696_v50, 0.0  ;;  %v1695_v52 = vmul.f32 %v1693_v49, %v1693_v49 }
 0xa13   : > { %1701 = vadd.xlane.f32.xlu0 %v1700_v51 }
 0xa14   : > { %v1697_v24 = vsel %vm961_vm2, %v1695_v52, 0.0 }
 0xa15   : > { %1698 = vadd.xlane.f32.xlu1 %v1697_v24 }
 0xa9c   : > { %v1702_v56 = vpop.xlane.xlu0 %1701 }
 0xa9d   : > { %v1704_v57 = vmul.f32 0.03125, %v1702_v56 }
 0xa9e   : > { %v1699_v58 = vpop.xlane.xlu1 %1698 }
 0xa9f   : > { %v1706_v59 = vadd.f32 1e-12, %v1704_v57  ;;  %v1703_v60 = vmul.f32 0.03125, %v1699_v58 }
 0xaa1   : > { %3776 = vrsqrt.f32 %v1706_v59  ;;  %v1705_v61 = vadd.f32 1e-12, %v1703_v60  ;;  %v3295_v59 = vld [vmem:[%s4691_s21 + $0x38] sm:$0xff]  ;;  %v3294_v60 = vld [vmem:[%s4691_s21 + $0x30] sm:$0xff] }
 0xaa2   : > { %3596 = vmatprep.subr.mxu0 %v3295_v59 }
 0xaa3   : > { %3778 = vrsqrt.f32 %v1705_v61  ;;  %v3293_v61 = vld [vmem:[%s4691_s21 + $0x28] sm:$0xff] }
 0xaae   : > { %v3777_v62 = vpop.eup %3776 }
 0xaaf   : > { %v1710_v0 = vmul.f32 %v3777_v62, %v1694_v47  ;;  %v3292_v62 = vld [vmem:[%s4691_s21 + $0x20] sm:$0xff] }
 0xab0   : > { %v3779_v1 = vpop.eup %3778 }
 0xab1   : > { %v1709_v2 = vmul.f32 %v3779_v1, %v1693_v49  ;;  %v1718_v3 = vmul.f32 %v3282_v63, %v1710_v0 }
 0xab3   : > { %v1717_v5 = vmul.f32 %v3282_v63, %v1709_v2  ;;  %v1726_v7 = vadd.f32 %v3283_v4, %v1718_v3 }
 0xab5   : > { %v4306_v6 = vadd.f32 %v3283_v4, %v1717_v5 }
 0xab7   : > { %3574 = vmatprep.mubr.msk.f32.mxu0 %vm961_vm2, %v4306_v6 }
 0xab8   : > { %3575 = vmatmul.mubr.msk.f32.vlgmr.msra.gmra.mxu0 %vm961_vm2, %v1726_v7 }
 0xab9   : > { %3597 = vmatpush3.msra.mxu0 %v3295_v59 }
 0xaba   : > { %3598 = vmatprep.subr.mxu0 %v3294_v60 }
 0xabb   : > { %3599 = vmatpush3.msra.mxu0 %v3294_v60 }
 0xabc   : > { %3600 = vmatprep.subr.mxu0 %v3293_v61 }
 0xabd   : > { %3601 = vmatpush3.msra.mxu0 %v3293_v61 }
 0xabe   : > { %3602 = vmatprep.subr.mxu0 %v3292_v62 }
 0xabf   : > { %3603 = vmatpush3.msra.mxu0 %v3292_v62 }
 0xb78   : > { %v3576_v17 = vpop.f32.mrf.mxu0 }
 0xb79   : > { %v1816_v18 = vadd.f32 %v3576_v17, %v3284_v16 }
 0xb7a   : > { %v1810_v19 = vpop.f32.mrf.mxu0 }
 0xb7b   : > { %v1820_v21 = vmul.f32 %v1816_v18, %v1816_v18  ;;  %v1811_v23 = vadd.f32 %v3284_v16, %v1810_v19 }
 0xb7d   : > { %v1822_v25 = vmul.f32 %v1820_v21, %v1816_v18  ;;  %v1819_v26 = vmul.f32 %v1811_v23, %v1811_v23 }
 0xb7f   : > { %v1824_v27 = vmul.f32 0.044715, %v1822_v25  ;;  %v1821_v28 = vmul.f32 %v1819_v26, %v1811_v23 }
 0xb81   : > { %v1826_v29 = vadd.f32 %v1824_v27, %v1816_v18  ;;  %v1823_v30 = vmul.f32 0.044715, %v1821_v28 }
 0xb83   : > { %v1828_v31 = vmul.f32 0.7978846, %v1826_v29  ;;  %v1825_v32 = vadd.f32 %v1823_v30, %v1811_v23 }
 0xb85   : > { %3780 = vtanh.f32 %v1828_v31  ;;  %v1827_v33 = vmul.f32 0.7978846, %v1825_v32 }
 0xb87   : > { %3782 = vtanh.f32 %v1827_v33 }
 0xb92   : > { %v3781_v34 = vpop.eup %3780 }
 0xb93   : > { %v1832_v35 = vadd.f32 1.0, %v3781_v34 }
 0xb94   : > { %v3783_v36 = vpop.eup %3782 }
 0xb95   : > { %v1831_v37 = vadd.f32 1.0, %v3783_v36  ;;  %v1834_v38 = vmul.f32 0.5, %v1832_v35 }
 0xb97   : > { %v1833_v39 = vmul.f32 0.5, %v1831_v37  ;;  %v1836_v41 = vmul.f32 %v1834_v38, %v1816_v18 }
 0xb99   : > { %v1835_v40 = vmul.f32 %v1833_v39, %v1811_v23 }
 0xb9b   : > { %3593 = vmatprep.mubr.msk.f32.mxu1 %vm1852_vm4, %v1835_v40 }
 0xb9c   : > { %3594 = vmatmul.mubr.msk.f32.vlgmr.msra.gmra.mxu1 %vm1852_vm4, %v1836_v41 }
 0xc5c   : > { %v3595_v43 = vpop.f32.mrf.mxu1 }
 0xc5d   : > { %v1931_v44 = vadd.f32 %v3595_v43, %v3287_v42 }
 0xc5e   : > { %v1925_v45 = vpop.f32.mrf.mxu1 }
 0xc5f   : > { %v1926_v46 = vadd.f32 %v3287_v42, %v1925_v45  ;;  %v1935_v47 = vadd.f32 %v1931_v44, %v1726_v7 }
 0xc61   : > { %v1941_v48 = vsel %vm961_vm2, %v1935_v47, 0.0  ;;  %v1934_v49 = vadd.f32 %v1926_v46, %v4306_v6  ;;  %v3290_v6 = vld [vmem:[%s4631_s18] ss:$0 sm:$0xff] }
 0xc62   : > { %1942 = vadd.xlane.f32.xlu0 %v1941_v48 }
 0xc63   : > { %v1938_v50 = vsel %vm961_vm2, %v1934_v49, 0.0 }
 0xc64   : > { %1939 = vadd.xlane.f32.xlu1 %v1938_v50 }
 0xceb   : > { %v1943_v51 = vpop.xlane.xlu0 %1942 }
 0xcec   : > { %v1945_v52 = vmul.f32 0.03125, %v1943_v51 }
 0xced   : > { %v1940_v24 = vpop.xlane.xlu1 %1939 }
 0xcee   : > { %v1947_v22 = vsub.f32 %v1935_v47, %v1945_v52  ;;  %v1944_v53 = vmul.f32 0.03125, %v1940_v24  ;;  %v3307_v24 = vld [vmem:[%s4696_s10 + $0x28] sm:$0xff] }
 0xcf0   : > { %v1946_v54 = vsub.f32 %v1934_v49, %v1944_v53  ;;  %v1949_v55 = vmul.f32 %v1947_v22, %v1947_v22 }
 0xcf2   : > { %v1953_v56 = vsel %vm961_vm2, %v1949_v55, 0.0  ;;  %v1948_v57 = vmul.f32 %v1946_v54, %v1946_v54 }
 0xcf3   : > { %1954 = vadd.xlane.f32.xlu0 %v1953_v56 }
 0xcf4   : > { %v1950_v58 = vsel %vm961_vm2, %v1948_v57, 0.0 }
 0xcf5   : > { %1951 = vadd.xlane.f32.xlu1 %v1950_v58 }
 0xd7c   : > { %v1955_v63 = vpop.xlane.xlu0 %1954 }
 0xd7d   : > { %v1957_v0 = vmul.f32 0.03125, %v1955_v63 }
 0xd7e   : > { %v1952_v1 = vpop.xlane.xlu1 %1951 }
 0xd7f   : > { %v1959_v2 = vadd.f32 1e-12, %v1957_v0  ;;  %v1956_v3 = vmul.f32 0.03125, %v1952_v1 }
 0xd81   : > { %3784 = vrsqrt.f32 %v1959_v2  ;;  %v1958_v4 = vadd.f32 1e-12, %v1956_v3 }
 0xd83   : > { %3786 = vrsqrt.f32 %v1958_v4 }
 0xd8e   : > { %v3785_v5 = vpop.eup %3784 }
 0xd8f   : > { %v1963_v7 = vmul.f32 %v3785_v5, %v1947_v22  ;;  %v3306_v22 = vld [vmem:[%s4696_s10 + $0x20] sm:$0xff] }
 0xd90   : > { %v3787_v8 = vpop.eup %3786 }
 0xd91   : > { %v1962_v9 = vmul.f32 %v3787_v8, %v1946_v54  ;;  %v1971_v10 = vmul.f32 %v3290_v6, %v1963_v7 }
 0xd93   : > { %v1970_v12 = vmul.f32 %v3290_v6, %v1962_v9  ;;  %v4368_v14 = vadd.f32 %v3291_v11, %v1971_v10  ;;  %v3315_v10 = vld [vmem:[%s4696_s10 + $0x38] sm:$0xff] }
 0xd95   : > { %v4366_v13 = vadd.f32 %v3291_v11, %v1970_v12 }
 0xd97   : > { %3604 = vmatprep.mubr.msk.f32.mxu0 %vm961_vm2, %v4366_v13 }
 0xd98   : > { %3605 = vmatmul.mubr.msk.f32.vlgmr.msra.gmra.mxu0 %vm961_vm2, %v4368_v14 }
 0xe58   : > { %v3606_v16 = vpop.f32.mrf.mxu0 }
 0xe59   : > { %v4377_v17 = vadd.f32 %v3606_v16, %v3297_v15 }
 0xe5a   : > { %v2065_v18 = vpop.f32.mrf.mxu0 }
 0xe5b   : > { %v4379_v19 = vadd.f32 %v3297_v15, %v2065_v18  ;;  %2078 = vrot.lane.b32.xlu1 %v4377_v17, %s3914_s30 }
 0xe5d   : > { %2076 = vrot.lane.b32.xlu0 %v4379_v19, %s3914_s30  ;;  %3611 = vmatprep.mubr.msk.f32.mxu0 %vm1112_vm3, %v4379_v19  ;;  %s4548_s30 = sand.u32 1, %s3902_s2  }
 0xe5e   : > { %s786_s9 = scalar_lea.vmem [#allocation2], %s4548_s30 }
 0xecd   : > { %v2079_v21 = vpop.permute.xlu1 %2078 }
 0xece   : > { %3607 = vmatprep.subr.msk.mxu0 %vm1112_vm3, %v2079_v21 }
 0xecf   : > { %3608 = vmatpush3.xpose.msk.msra.mxu0 %vm1112_vm3, %v2079_v21  ;;  %v2077_v23 = vpop.permute.xlu0 %2076 }
 0xed0   : > { %3609 = vmatprep.subr.msk.mxu0 %vm1112_vm3, %v2077_v23 }
 0xed3   : > { %3610 = vmatpush3.xpose.msk.msra.mxu0 %vm1112_vm3, %v2077_v23 }
 0xed6   : > { %3612 = vmatmul.mubr.msk.f32.vlgmr.msra.gmra.mxu0 %vm1112_vm3, %v4377_v17 }
 0xf96   : > { %v3613_v25 = vpop.f32.mrf.mxu0 }
 0xf97   : > { %v2160_v26 = vadd.f32 %v3613_v25, %v4131_v20  ;;  %v3321_v25 = vld [vmem:[%s4624_s11 + $0x1] ss:$0 sm:$0xff] }
 0xf98   : > { %v2154_v27 = vpop.f32.mrf.mxu0 }
 0xf99   : > { %v2155_v28 = vadd.f32 %v2154_v27, %v4131_v20  ;;  %v2166_v29 = vsel %vm1112_vm3, %v2160_v26, -inf }
 0xf9a   : > { %2167 = vmax.xlane.f32.xlu0 %v2166_v29 }
 0xf9b   : > { %v2163_v30 = vsel %vm1112_vm3, %v2155_v28, -inf }
 0xf9c   : > { %2164 = vmax.xlane.f32.xlu1 %v2163_v30 }
 0xfad   : > { %2187 = vrot.lane.b32.xlu1 %v4377_v17, %s3915_s7 }
 0xfb1   : > { %2281 = vrot.lane.b32.xlu1 %v4377_v17, %s3916_s26 }
 0xfb5   : > { %2279 = vrot.lane.b32.xlu1 %v4379_v19, %s3916_s26 }
0x1023   : > { %v2168_v31 = vpop.xlane.xlu0 %2167 }
0x1024   : > { %v2170_v32 = vsub.f32 %v2160_v26, %v2168_v31 }
0x1025   : > { %v2165_v33 = vpop.xlane.xlu1 %2164 }
0x1026   : > { %v2173_v34 = vmul.f32 1.442695, %v2170_v32  ;;  %v2169_v35 = vsub.f32 %v2155_v28, %v2165_v33 }
0x1028   : > { %3788 = vpow2.f32 %v2173_v34  ;;  %v2171_v36 = vmul.f32 1.442695, %v2169_v35 }
0x1029   : > { %v2188_v37 = vpop.permute.xlu1 %2187 }
0x102a   : > { %3790 = vpow2.f32 %v2171_v36  ;;  %3614 = vmatprep.subr.mxu1 %v2188_v37 }
0x102b   : > { %3615 = vmatpush3.msra.mxu1 %v2188_v37 }
0x102d   : > { %v2282_v42 = vpop.permute.xlu1 %2281 }
0x1031   : > { %v2280_v43 = vpop.permute.xlu1 %2279 }
0x1035   : > { %v3789_v38 = vpop.eup %3788 }
0x1036   : > { %v2178_v39 = vsel %vm1112_vm3, %v3789_v38, 0.0 }
0x1037   : > { %v3791_v40 = vpop.eup %3790  ;;  %2179 = vadd.xlane.f32.xlu0 %v2178_v39 }
0x1038   : > { %v2175_v41 = vsel %vm1112_vm3, %v3791_v40, 0.0 }
0x1039   : > { %2176 = vadd.xlane.f32.xlu1 %v2175_v41 }
0x104a   : > { %2277 = vrot.lane.b32.xlu1 %v4377_v17, %s3917_s27 }
0x104d   : > { %2185 = vrot.lane.b32.xlu0 %v4379_v19, %s3915_s7  ;;  %s3111_s7 = scalar_lea.sflag [#allocation3], %s4548_s30 }
0x1051   : > { %2275 = vrot.lane.b32.xlu0 %v4379_v19, %s3917_s27  ;;  %s4698_s27 = sld [smem:[#allocation28_spill]] }
0x10c0   : > { %v2180_v44 = vpop.xlane.xlu0 %2179 }
0x10c1   : > { %3792 = vrcp.f32 %v2180_v44 }
0x10c2   : > { %v2177_v45 = vpop.xlane.xlu1 %2176 }
0x10c3   : > { %3794 = vrcp.f32 %v2177_v45  ;;  %v3328_v45 = vld [vmem:[%s4627_s14 + $0x30] sm:$0xff] }
0x10c4   : > { %v2186_v46 = vpop.permute.xlu0 %2185 }
0x10c5   : > { %3616 = vmatprep.subr.mxu1 %v2186_v46 }
0x10c6   : > { %3617 = vmatpush3.msra.mxu1 %v2186_v46  ;;  %v2278_v52 = vpop.permute.xlu1 %2277  ;;  %v3327_v46 = vld [vmem:[%s4627_s14 + $0x28] sm:$0xff] }
0x10c7   : > { %3621 = vmatprep.subr.msk.mxu1 %vm1112_vm3, %v2282_v42 }
0x10c8   : > { %v2276_v51 = vpop.permute.xlu0 %2275 }
0x10ce   : > { %v3793_v47 = vpop.eup %3792 }
0x10cf   : > { %v2184_v50 = vmul.f32 %v3793_v47, %v3789_v38  ;;  %v3326_v47 = vld [vmem:[%s4627_s14 + $0x20] sm:$0xff] }
0x10d0   : > { %v3795_v48 = vpop.eup %3794 }
0x10d1   : > { %v2183_v49 = vmul.f32 %v3795_v48, %v3791_v40 }
0x10d3   : > { %3618 = vmatprep.mubr.msk.f32.mxu1 %vm1112_vm3, %v2183_v49 }
0x10d4   : > { %3619 = vmatmul.mubr.msk.f32.vlgmr.msra.gmra.mxu1 %vm1112_vm3, %v2184_v50 }
0x10d5   : > { %3622 = vmatpush3.xpose.msk.msra.mxu1 %vm1112_vm3, %v2282_v42  ;;  %3625 = vmatprep.mubr.msk.f32.mxu1 %vm1112_vm3, %v2276_v51 }
0x10d6   : > { %3623 = vmatprep.subr.msk.mxu1 %vm1112_vm3, %v2280_v43 }
0x10d9   : > { %3624 = vmatpush3.xpose.msk.msra.mxu1 %vm1112_vm3, %v2280_v43 }
0x10da   : > { %3642 = vmatprep.subr.mxu1 %v3307_v24 }
0x10dc   : > { %3626 = vmatmul.mubr.msk.f32.vlgmr.msra.gmra.mxu1 %vm1112_vm3, %v2278_v52 }
0x10dd   : > { %3643 = vmatpush3.msra.mxu1 %v3307_v24 }
0x10de   : > { %3644 = vmatprep.subr.mxu1 %v3306_v22 }
0x10df   : > { %3645 = vmatpush3.msra.mxu1 %v3306_v22 }
0x1194   : > { %v3620_v53 = vpop.f32.mrf.mxu1 }
0x1196   : > { %v2263_v54 = vpop.f32.mrf.mxu1 }
0x1197   : > { %3646 = vmatprep.mubr.msk.f32.mxu1 %vm1112_vm3, %v2263_v54 }
0x1198   : > { %3647 = vmatmul.mubr.msk.f32.vlgmr.msra.gmra.mxu1 %vm1112_vm3, %v3620_v53  ;;  %v3324_v53 = vld [vmem:[%s4625_s12 + $0x1] ss:$0 sm:$0xff] }
0x119c   : > { %v3627_v55 = vpop.f32.mrf.mxu1 }
0x119d   : > { %v2363_v56 = vadd.f32 %v3627_v55, %v4131_v20 }
0x119e   : > { %v2357_v57 = vpop.f32.mrf.mxu1 }
0x119f   : > { %v2358_v58 = vadd.f32 %v2357_v57, %v4131_v20  ;;  %v2369_v59 = vsel %vm1112_vm3, %v2363_v56, -inf }
0x11a0   : > { %2370 = vmax.xlane.f32.xlu1 %v2369_v59 }
0x11a1   : > { %v2366_v60 = vsel %vm1112_vm3, %v2358_v58, -inf }
0x11a2   : > { %2367 = vmax.xlane.f32.xlu0 %v2366_v60 }
0x11b1   : > { %2390 = vrot.lane.b32.xlu1 %v4377_v17, %s3918_s28  ;;  %v3314_v17 = vld [vmem:[%s4696_s10 + $0x30] sm:$0xff] }
0x1229   : > { %v2371_v61 = vpop.xlane.xlu1 %2370 }
0x122a   : > { %v2373_v62 = vsub.f32 %v2363_v56, %v2371_v61 }
0x122b   : > { %v2368_v63 = vpop.xlane.xlu0 %2367 }
0x122c   : > { %v2376_v0 = vmul.f32 1.442695, %v2373_v62  ;;  %v2372_v1 = vsub.f32 %v2358_v58, %v2368_v63  ;;  %v3325_v58 = vld [vmem:[%s4626_s13 + $0x1] ss:$0 sm:$0xff]  ;;  %v3341_v62 = vld [vmem:[%s4629_s16 + $0x78] sm:$0xff]  ;;  %v3340_v63 = vld [vmem:[%s4629_s16 + $0x70] sm:$0xff] }
0x122d   : > { %v2391_v2 = vpop.permute.xlu1 %2390  ;;  %3660 = vmatprep.subr.mxu1 %v3341_v62 }
0x122e   : > { %3796 = vpow2.f32 %v2376_v0  ;;  %v2374_v3 = vmul.f32 1.442695, %v2372_v1  ;;  %3628 = vmatprep.subr.mxu0 %v2391_v2  ;;  %3661 = vmatpush3.msra.mxu1 %v3341_v62  ;;  %v3339_v0 = vld [vmem:[%s4629_s16 + $0x68] sm:$0xff]  ;;  %v3338_v1 = vld [vmem:[%s4629_s16 + $0x60] sm:$0xff] }
0x122f   : > { %3629 = vmatpush3.msra.mxu0 %v2391_v2  ;;  %3662 = vmatprep.subr.mxu1 %v3340_v63  ;;  %v3337_v2 = vld [vmem:[%s4629_s16 + $0x58] sm:$0xff] }
0x1230   : > { %3798 = vpow2.f32 %v2374_v3  ;;  %3663 = vmatpush3.msra.mxu1 %v3340_v63  ;;  %v3336_v3 = vld [vmem:[%s4629_s16 + $0x50] sm:$0xff]  ;;  %v3022_v63 = vld [vmem:[%s4698_s27] sm:$0x1]  ;;  %s3921_s27 = smov [#allocation2]  }
0x1231   : > { %3664 = vmatprep.subr.mxu1 %v3339_v0  ;;  %s3824_s0 = sshll.u32 %s3921_s27, 4  ;;  %s3825_s0 = int_to_ptr.vmem [resolvable:$false] %s3824_s0 }
0x1232   : > { %3665 = vmatpush3.msra.mxu1 %v3339_v0  ;;  %s3826_s3 = scalar_lea.vmem %s3825_s0, 32 }
0x1233   : > { %3666 = vmatprep.subr.mxu1 %v3338_v1 }
0x1234   : > { %3667 = vmatpush3.msra.mxu1 %v3338_v1 }
0x1235   : > { %3668 = vmatprep.subr.mxu1 %v3337_v2 }
0x1236   : > { %3669 = vmatpush3.msra.mxu1 %v3337_v2 }
0x1237   : > { %3670 = vmatprep.subr.mxu1 %v3336_v3 }
0x1238   : > { %3671 = vmatpush3.msra.mxu1 %v3336_v3 }
0x123b   : > { %v3797_v20 = vpop.eup %3796 }
0x123c   : > { %v2381_v4 = vsel %vm1112_vm3, %v3797_v20, 0.0 }
0x123d   : > { %v3799_v5 = vpop.eup %3798  ;;  %2382 = vadd.xlane.f32.xlu0 %v2381_v4  ;;  %v3334_v4 = vld [vmem:[%s4629_s16 + $0x40] sm:$0xff] }
0x123e   : > { %v2378_v6 = vsel %vm1112_vm3, %v3799_v5, 0.0 }
0x1241   : > { %2379 = vadd.xlane.f32.xlu0 %v2378_v6 }
0x1257   : > { %2388 = vrot.lane.b32.xlu0 %v4379_v19, %s3918_s28 }
0x1258   : > { %v3648_v21 = vpop.f32.mrf.mxu1 }
0x125a   : > { %v2631_v27 = vpop.f32.mrf.mxu1 }
0x12c6   : > { %v2383_v7 = vpop.xlane.xlu0 %2382 }
0x12c7   : > { %3800 = vrcp.f32 %v2383_v7 }
0x12ca   : > { %v2380_v8 = vpop.xlane.xlu0 %2379 }
0x12cb   : > { %3802 = vrcp.f32 %v2380_v8 }
0x12ce   : > { %v2389_v9 = vpop.permute.xlu0 %2388 }
0x12cf   : > { %3630 = vmatprep.subr.mxu0 %v2389_v9 }
0x12d0   : > { %3631 = vmatpush3.msra.mxu0 %v2389_v9 }
0x12d1   : > { %3635 = vmatprep.subr.mxu0 %v3315_v10 }
0x12d4   : > { %v3801_v11 = vpop.eup %3800 }
0x12d5   : > { %v2387_v16 = vmul.f32 %v3801_v11, %v3797_v20  ;;  %v3335_v20 = vld [vmem:[%s4629_s16 + $0x48] sm:$0xff] }
0x12d6   : > { %3672 = vmatprep.subr.mxu1 %v3335_v20 }
0x12d7   : > { %3673 = vmatpush3.msra.mxu1 %v3335_v20 }
0x12d8   : > { %v3803_v12 = vpop.eup %3802  ;;  %3674 = vmatprep.subr.mxu1 %v3334_v4 }
0x12d9   : > { %v2386_v15 = vmul.f32 %v3803_v12, %v3799_v5  ;;  %3675 = vmatpush3.msra.mxu1 %v3334_v4  ;;  %v3331_v5 = vld [vmem:[%s4628_s15 + $0x1] ss:$0 sm:$0xff] }
0x12db   : > { %3632 = vmatprep.mubr.msk.f32.mxu0 %vm1112_vm3, %v2386_v15 }
0x12dc   : > { %3633 = vmatmul.mubr.msk.f32.vlgmr.msra.gmra.mxu0 %vm1112_vm3, %v2387_v16 }
0x12dd   : > { %3636 = vmatpush3.msra.mxu0 %v3315_v10 }
0x12de   : > { %3637 = vmatprep.subr.mxu0 %v3314_v17 }
0x12df   : > { %3638 = vmatpush3.msra.mxu0 %v3314_v17 }
0x139c   : > { %v3634_v18 = vpop.f32.mrf.mxu0 }
0x139e   : > { %v2466_v19 = vpop.f32.mrf.mxu0 }
0x139f   : > { %3639 = vmatprep.mubr.msk.f32.mxu0 %vm1112_vm3, %v2466_v19 }
0x13a0   : > { %3640 = vmatmul.mubr.msk.f32.vlgmr.msra.gmra.mxu0 %vm1112_vm3, %v3634_v18 }
0x1460   : > { %v3641_v23 = vpop.f32.mrf.mxu0 }
0x1461   : > { %v2637_v26 = vadd.f32 %v3648_v21, %v3641_v23 }
0x1462   : > { %v2550_v28 = vpop.f32.mrf.mxu0 }
0x1463   : > { %v2649_v29 = vadd.f32 %v3321_v25, %v2637_v26  ;;  %v2632_v30 = vadd.f32 %v2631_v27, %v2550_v28 }
0x1465   : > { %v2648_v31 = vadd.f32 %v3321_v25, %v2632_v30  ;;  %v2651_v32 = vadd.f32 %v2649_v29, %v4368_v14 }
0x1467   : > { %v2659_v33 = vsel %vm961_vm2, %v2651_v32, 0.0  ;;  %v2650_v34 = vadd.f32 %v2648_v31, %v4366_v13  ;;  %v3329_v13 = vld [vmem:[%s4627_s14 + $0x38] sm:$0xff] }
0x1468   : > { %2660 = vadd.xlane.f32.xlu0 %v2659_v33  ;;  %3649 = vmatprep.subr.mxu0 %v3329_v13 }
0x1469   : > { %v2656_v35 = vsel %vm961_vm2, %v2650_v34, 0.0  ;;  %3650 = vmatpush3.msra.mxu0 %v3329_v13  ;;  %v2941_v13 = vld [vmem:[%s4633_s20 + $0x10] sm:$0xff] }
0x146a   : > { %2657 = vadd.xlane.f32.xlu1 %v2656_v35  ;;  %3651 = vmatprep.subr.mxu0 %v3328_v45 }
0x146b   : > { %3652 = vmatpush3.msra.mxu0 %v3328_v45  ;;  %v2940_v45 = vld [vmem:[%s4633_s20 + $0x8] sm:$0xff] }
0x146c   : > { %3653 = vmatprep.subr.mxu0 %v3327_v46 }
0x146d   : > { %3654 = vmatpush3.msra.mxu0 %v3327_v46  ;;  %v2939_v46 = vld [vmem:[%s4633_s20] sm:$0xff] }
0x146e   : > { %3655 = vmatprep.subr.mxu0 %v3326_v47 }
0x146f   : > { %3656 = vmatpush3.msra.mxu0 %v3326_v47 }
0x14f1   : > { %v2661_v36 = vpop.xlane.xlu0 %2660 }
0x14f2   : > { %v2663_v37 = vmul.f32 0.03125, %v2661_v36 }
0x14f3   : > { %v2658_v38 = vpop.xlane.xlu1 %2657 }
0x14f4   : > { %v2665_v39 = vsub.f32 %v2651_v32, %v2663_v37  ;;  %v2662_v40 = vmul.f32 0.03125, %v2658_v38 }
0x14f6   : > { %v2664_v41 = vsub.f32 %v2650_v34, %v2662_v40  ;;  %v2667_v42 = vmul.f32 %v2665_v39, %v2665_v39  ;;  %v3343_v34 = vld [vmem:[%s4630_s17 + $0x1] ss:$0 sm:$0xff] }
0x14f8   : > { %v2671_v43 = vsel %vm961_vm2, %v2667_v42, 0.0  ;;  %v2666_v44 = vmul.f32 %v2664_v41, %v2664_v41 }
0x14f9   : > { %2672 = vadd.xlane.f32.xlu0 %v2671_v43 }
0x14fa   : > { %v2668_v14 = vsel %vm961_vm2, %v2666_v44, 0.0  ;;  %v3919_v44 = vmov 0.0  }
0x14fb   : > { %2669 = vadd.xlane.f32.xlu1 %v2668_v14  ;;  %3679 = vmatprep.subr.mxu0 %v3919_v44  ;;  %v2942_v14 = vld [vmem:[%s4633_s20 + $0x18] sm:$0xff] }
0x1582   : > { %v2673_v48 = vpop.xlane.xlu0 %2672 }
0x1583   : > { %v2675_v49 = vmul.f32 0.03125, %v2673_v48 }
0x1584   : > { %v2670_v50 = vpop.xlane.xlu1 %2669 }
0x1585   : > { %v2677_v51 = vadd.f32 1e-12, %v2675_v49  ;;  %v2674_v52 = vmul.f32 0.03125, %v2670_v50 }
0x1587   : > { %3804 = vrsqrt.f32 %v2677_v51  ;;  %v2676_v24 = vadd.f32 1e-12, %v2674_v52  ;;  %v3348_v51 = vld [vmem:[%s4631_s18 + $0x1] ss:$0 sm:$0xff] }
0x1589   : > { %3806 = vrsqrt.f32 %v2676_v24  ;;  %v3349_v24 = vld [vmem:[%s4632_s19 + $0x1] ss:$0 sm:$0xff] }
0x1594   : > { %v3805_v22 = vpop.eup %3804 }
0x1595   : > { %v2681_v54 = vmul.f32 %v3805_v22, %v2665_v39 }
0x1596   : > { %v3807_v55 = vpop.eup %3806 }
0x1597   : > { %v2680_v56 = vmul.f32 %v3807_v55, %v2664_v41  ;;  %v2689_v57 = vmul.f32 %v3324_v53, %v2681_v54  ;;  %v3021_v54 = vld [vmem:[%s4635_s22 + $0x18] sm:$0xff]  ;;  %v3020_v55 = vld [vmem:[%s4635_s22 + $0x10] sm:$0xff] }
0x1599   : > { %v2688_v59 = vmul.f32 %v3324_v53, %v2680_v56  ;;  %v2697_v61 = vadd.f32 %v3325_v58, %v2689_v57  ;;  %v3019_v56 = vld [vmem:[%s4635_s22 + $0x8] sm:$0xff]  ;;  %v3018_v57 = vld [vmem:[%s4635_s22] sm:$0xff] }
0x159b   : > { %v2696_v60 = vadd.f32 %v3325_v58, %v2688_v59  ;;  %v2943_v58 = vld [vmem:[%s4697_s29] sm:$0x1]  ;;  %s3127_s29 = sshll.u32 %s786_s9, 4  ;;  %s3128_s29 = int_to_ptr.vmem [resolvable:$true] %s3127_s29 }
0x159c   : > { %s3820_s26 = scalar_lea.vmem %s3128_s29, 16  ;;  %p3827_p0 = scmp.lt.s32.totalorder %s3128_s29, %s3825_s0 }
0x159d   : > { %3657 = vmatprep.mubr.msk.f32.mxu0 %vm961_vm2, %v2696_v60  ;;  %p3821_p11 = scmp.ne.s32.totalorder %s3128_s29, %s3820_s26  ;;  %p3828_p1 = scmp.lt.s32.totalorder %s3826_s3, %s3820_s26 }
0x159e   : > { %3658 = vmatmul.mubr.msk.f32.vlgmr.msra.gmra.mxu0 %vm961_vm2, %v2697_v61 }
0x159f   : > { %3680 = vmatpush3.msra.mxu0 %v2942_v14  ;;  %3687 = vmatprep.mubr.msk.f32.mxu0 %vm3920_vm5, %v3919_v44  ;;  %p3822_p12 = pnand %p3821_p11, %p4091_p5  ;;  %p3829_p2 = por %p3828_p1, %p3827_p0 }
0x15a0   : > { %3681 = vmatprep.subr.mxu0 %v3919_v44 }
0x15a1   : > { %3682 = vmatpush3.msra.mxu0 %v2941_v13  ;;  %p3823_p13 = pneg %p3822_p12 }
0x15a2   : > { %3683 = vmatprep.subr.mxu0 %v3919_v44 }
0x15a3   : > { %3684 = vmatpush3.msra.mxu0 %v2940_v45  ;;  %p3830_p3 = pnand %p3829_p2, %p3823_p13 }
0x15a4   : > { %3685 = vmatprep.subr.mxu0 %v3919_v44 }
0x15a5   : > { %3686 = vmatpush3.msra.mxu0 %v2939_v46 }
0x15a6   : > { %3690 = vmatprep.subr.mxu0 %v3919_v44 }
0x165e   : > { %v3659_v6 = vpop.f32.mrf.mxu0 }
0x165f   : > { %v2789_v7 = vadd.f32 %v3659_v6, %v3331_v5 }
0x1660   : > { %v2783_v8 = vpop.f32.mrf.mxu0 }
0x1661   : > { %v2793_v9 = vmul.f32 %v2789_v7, %v2789_v7  ;;  %v2784_v10 = vadd.f32 %v3331_v5, %v2783_v8 }
0x1663   : > { %v2795_v11 = vmul.f32 %v2793_v9, %v2789_v7  ;;  %v2792_v12 = vmul.f32 %v2784_v10, %v2784_v10 }
0x1665   : > { %v2797_v15 = vmul.f32 0.044715, %v2795_v11  ;;  %v2794_v16 = vmul.f32 %v2792_v12, %v2784_v10 }
0x1667   : > { %v2799_v17 = vadd.f32 %v2797_v15, %v2789_v7  ;;  %v2796_v18 = vmul.f32 0.044715, %v2794_v16 }
0x1669   : > { %v2801_v19 = vmul.f32 0.7978846, %v2799_v17  ;;  %v2798_v21 = vadd.f32 %v2796_v18, %v2784_v10 }
0x166b   : > { %3808 = vtanh.f32 %v2801_v19  ;;  %v2800_v23 = vmul.f32 0.7978846, %v2798_v21 }
0x166d   : > { %3810 = vtanh.f32 %v2800_v23 }
0x1678   : > { %v3809_v25 = vpop.eup %3808 }
0x1679   : > { %v2805_v26 = vadd.f32 1.0, %v3809_v25 }
0x167a   : > { %v3811_v27 = vpop.eup %3810 }
0x167b   : > { %v2804_v28 = vadd.f32 1.0, %v3811_v27  ;;  %v2807_v29 = vmul.f32 0.5, %v2805_v26 }
0x167d   : > { %v2806_v30 = vmul.f32 0.5, %v2804_v28  ;;  %v2809_v32 = vmul.f32 %v2807_v29, %v2789_v7 }
0x167f   : > { %v2808_v31 = vmul.f32 %v2806_v30, %v2784_v10 }
0x1681   : > { %3676 = vmatprep.mubr.msk.f32.mxu1 %vm1852_vm4, %v2808_v31 }
0x1682   : > { %3677 = vmatmul.mubr.msk.f32.vlgmr.msra.gmra.mxu1 %vm1852_vm4, %v2809_v32 }
0x1742   : > { %v3678_v33 = vpop.f32.mrf.mxu1 }
0x1744   : > { %v2899_v35 = vpop.f32.mrf.mxu1 }
0x1745   : > { %v2900_v36 = vadd.f32 %v3343_v34, %v2899_v35 }
0x1747   : > { %v2907_v37 = vadd.f32 %v2900_v36, %v2696_v60 }
0x1749   : > { %v2912_v38 = vsel %vm961_vm2, %v2907_v37, 0.0 }
0x174a   : > { %2913 = vadd.xlane.f32.xlu1 %v2912_v38 }
0x17d3   : > { %v2914_v39 = vpop.xlane.xlu1 %2913 }
0x17d4   : > { %v2915_v40 = vmul.f32 0.03125, %v2914_v39 }
0x17d6   : > { %v2916_v41 = vsub.f32 %v2907_v37, %v2915_v40 }
0x17d8   : > { %v2917_v42 = vmul.f32 %v2916_v41, %v2916_v41 }
0x17da   : > { %v2918_v43 = vsel %vm961_vm2, %v2917_v42, 0.0 }
0x17db   : > { %2919 = vadd.xlane.f32.xlu0 %v2918_v43 }
0x1864   : > { %v2920_v47 = vpop.xlane.xlu0 %2919 }
0x1865   : > { %v2921_v48 = vmul.f32 0.03125, %v2920_v47 }
0x1867   : > { %v2922_v49 = vadd.f32 1e-12, %v2921_v48 }
0x1869   : > { %3812 = vrsqrt.f32 %v2922_v49 }
0x1876   : > { %v3813_v50 = vpop.eup %3812 }
0x1877   : > { %v2924_v52 = vmul.f32 %v3813_v50, %v2916_v41 }
0x1879   : > { %v2931_v22 = vmul.f32 %v3348_v51, %v2924_v52 }
0x187b   : > { %v2938_v53 = vadd.f32 %v3349_v24, %v2931_v22 }
0x187d   : > { %3688 = vmatmul.mubr.msk.f32.vlgmr.msra.gmra.mxu0 %vm961_vm2, %v2938_v53 }
0x187e   : > { %3698 = vmatprep.mubr.msk.f32.mxu0 %vm3920_vm5, %v3919_v44  ;;  %3691 = vmatpush3.msra.mxu0 %v3021_v54 }
0x187f   : > { %3692 = vmatprep.subr.mxu0 %v3919_v44 }
0x1880   : > { %3693 = vmatpush3.msra.mxu0 %v3020_v55 }
0x1881   : > { %3694 = vmatprep.subr.mxu0 %v3919_v44 }
0x1882   : > { %3695 = vmatpush3.msra.mxu0 %v3019_v56 }
0x1883   : > { %3696 = vmatprep.subr.mxu0 %v3919_v44 }
0x1884   : > { %3697 = vmatpush3.msra.mxu0 %v3018_v57 }
0x193d   : > { %v3013_v59 = vpop.f32.mrf.mxu0 }
0x193e   : > { %v3014_v60 = vadd.f32 %v3013_v59, %v2943_v58 }
0x193f   : > { %v3689_v61 = vpop.f32.mrf.mxu0 }
0x1940   : > { %3814 = vtanh.f32 %v3014_v60 }
0x194d   : > { %v3815_v62 = vpop.eup %3814 }
0x194e   : > { %3699 = vmatmul.mubr.msk.f32.vlgmr.msra.gmra.mxu0 %vm961_vm2, %v3815_v62 }
0x1a0e   : > { %v3092_v0 = vpop.f32.mrf.mxu0 }
0x1a0f   : > { %v3093_v1 = vadd.f32 %v3092_v0, %v3022_v63 }
0x1a10   : > { %v3700_v2 = vpop.f32.mrf.mxu0 }
0x1a11   : > { %v3097_v3 = vsel %vm3096_vm6, %v3093_v1, -inf  ;;  %3108 = vst.msk [vmem:[%s786_s9] sm:$0x1] %vm3096_vm6, %v3093_v1 }
0x1a12   : > { %3098 = vmax.xlane.f32.xlu1 %v3097_v3 }
0x1a9b   : > { %v3099_v20 = vpop.xlane.xlu1 %3098 }
0x1a9c   : > { %v3100_v4 = vsub.f32 %v3093_v1, %v3099_v20 }
0x1a9e   : > { %v3101_v5 = vmul.f32 1.442695, %v3100_v4 }
0x1aa0   : > { %3816 = vpow2.f32 %v3101_v5 }
0x1aad   : > { %v3817_v6 = vpop.eup %3816 }
0x1aae   : > { %v3103_v7 = vsel %vm3096_vm6, %v3817_v6, 0.0 }
0x1aaf   : > { %3104 = vadd.xlane.f32.xlu0 %v3103_v7 }
0x1ab0   : > { %3833 = shalt.err (!%p3830_p3)
}
0x1ab1   : > { %s3834_s4 = scalar_lea.hbm %s3125_s25, 16  ;;  %s3838_s6 = scalar_lea.hbm %s4701_s24, 32 }
0x1ab2   : > { %p3835_p4 = scmp.ne.s32.totalorder %s3125_s25, %s3834_s4  ;;  %p3839_p9 = scmp.lt.s32.totalorder %s3125_s25, %s4701_s24 }
0x1ab3   : > { %p3840_p10 = scmp.lt.s32.totalorder %s3838_s6, %s3834_s4 }
0x1ab4   : > { %p3836_p7 = pnand %p3835_p4, %p4091_p5 }
0x1ab5   : > { %p3841_p11 = por %p3840_p10, %p3839_p9 }
0x1ab6   : > { %p3837_p8 = pneg %p3836_p7 }
0x1ab8   : > { %p3842_p12 = pnand %p3841_p11, %p3837_p8 }
0x1aba   : > { %3845 = shalt.err (!%p3842_p12)
}
0x1abb   : > { %3701 = dma.vmem_to_hbm [thread:$0]  (%p4091_p5), %s3128_s29, 16, %s3125_s25, %s3111_s7  }
0x1abc   : > { %s792_s0 = scalar_lea.vmem [#allocation4], %s4548_s30  ;;  %s4702_s26 = sshll.u32 %s4699_s8, 4 }
0x1abd   : > { %s3140_s3 = sshll.u32 %s792_s0, 4  ;;  %s4703_s4 = sld [smem:[#allocation30_spill]]  ;;  %s3141_s3 = int_to_ptr.vmem [resolvable:$true] %s3140_s3 }
0x1abe   : > { %s3115_s9 = scalar_lea.sflag [#allocation5], %s4548_s30  ;;  %s3846_s1 = scalar_lea.vmem %s3141_s3, 16 }
0x1abf   : > { %p3847_p13 = scmp.ne.s32.totalorder %s3141_s3, %s3846_s1  ;;  %s3922_s25 = smov [#allocation4]  }
0x1ac0   : > { %s3850_s29 = sshll.u32 %s3922_s25, 4  ;;  %s3851_s29 = int_to_ptr.vmem [resolvable:$false] %s3850_s29 }
0x1ac1   : > { %p3848_p0 = pnand %p3847_p13, %p4091_p5  ;;  %s3852_s7 = scalar_lea.vmem %s3851_s29, 32 }
0x1ac2   : > { %p3853_p2 = scmp.lt.s32.totalorder %s3141_s3, %s3851_s29  ;;  %p3854_p3 = scmp.lt.s32.totalorder %s3852_s7, %s3846_s1 }
0x1ac3   : > { %s3138_s27 = scalar_lea.hbm %s4703_s4, %s4702_s26  ;;  %p3849_p1 = pneg %p3848_p0 }
0x1ac4   : > { %p3855_p4 = por %p3854_p3, %p3853_p2 }
0x1ac6   : > { %p3856_p7 = pnand %p3855_p4, %p3849_p1 }
0x1b38   : > { %v3105_v8 = vpop.xlane.xlu0 %3104 }
0x1b39   : > { %3818 = vrcp.f32 %v3105_v8 }
0x1b46   : > { %v3819_v9 = vpop.eup %3818 }
0x1b47   : > { %v3107_v10 = vmul.f32 %v3819_v9, %v3817_v6 }
0x1b49   : > { %3109 = vst.msk [vmem:[%s792_s0] sm:$0x1] %vm3096_vm6, %v3107_v10 }
0x1b4a   : > { %3859 = shalt.err (!%p3856_p7)
}
0x1b4b   : > { %s3860_s8 = scalar_lea.hbm %s3138_s27, 16  ;;  %s3864_s0 = scalar_lea.hbm %s4703_s4, 32 }
0x1b4c   : > { %p3861_p8 = scmp.ne.s32.totalorder %s3138_s27, %s3860_s8  ;;  %p3865_p11 = scmp.lt.s32.totalorder %s3138_s27, %s4703_s4 }
0x1b4d   : > { %p3866_p12 = scmp.lt.s32.totalorder %s3864_s0, %s3860_s8 }
0x1b4e   : > { %p3862_p9 = pnand %p3861_p8, %p4091_p5 }
0x1b4f   : > { %p3867_p13 = por %p3866_p12, %p3865_p11 }
0x1b50   : > { %p3863_p10 = pneg %p3862_p9 }
0x1b52   : > { %p3868_p0 = pnand %p3867_p13, %p3863_p10 }
0x1b54   : > { %3871 = shalt.err (!%p3868_p0)
}
0x1b55   : > { %3702 = dma.vmem_to_hbm [thread:$0]  (%p4091_p5), %s3141_s3, 16, %s3138_s27, %s3115_s9  }
0x1b56 PF: > { %s4704_s5 = sld [smem:[#allocation10_spill]] }
0x1b57   : > { %s4705_s1 = sld [smem:[#allocation8_spill]] }
0x1b5c   : > { %p3712_p1 = scmp.ge.s32.totalorder %s4704_s5, 2 }
0x1b5d   : > { %s3152_s29 = sand.u32 1, %s4705_s1  }
0x1b5e   : > { %p3706_p2 = pnand %p3712_p1, %p4095_p6  ;;  %s3153_s7 = scalar_lea.sflag [#allocation3], %s3152_s29 }
0x1b60   : > { %p3707_p3 = pneg %p3706_p2 }
0x1b62   : > { %3889 = dma.done.wait (%p3707_p3), %s3153_s7, 16  }
0x1b63   : > { %3891 = vsyncadd (%p3707_p3), %s3153_s7, 4294967280  ;;  %s3161_s30 = scalar_lea.sflag [#allocation5], %s3152_s29 }
0x1b64   : > { %3893 = dma.done.wait (%p3707_p3), %s3161_s30, 16  }
0x1b65   : > { %3895 = vsyncadd (%p3707_p3), %s3161_s30, 4294967280  ;;  %s4707_s30 = sld [smem:[#allocation12_spill]]  ;;  %s4710_s29 = smov %s3902_s2 }
0x1b66   : > { %s4708_s8 = sld [smem:[#allocation9_spill]] }
0x1b67   : > { %s4709_s6 = sld [smem:[#allocation13_spill]] }
0x1b6b   : > { %p39_p5 = scmp.ge.s32.totalorder %s4707_s30, 4  }
0x1b6c   : > { %s4711_s2 = smov %s4708_s8 }
0x1b6d   :  { %41 = sbr.rel (!%p39_p5) target bundleno = 21 (0x15), region = 188 }
0x1b72   :  { %3165 = vsyncpa [#allocation3], 1 }
0x1b73   :  { %3167 = vsyncpa [#allocation3 + $0x1], 1 }
0x1b74   :  { %3168 = vsyncpa [#allocation5], 1 }
0x1b75   :  { %3170 = vsyncpa [#allocation5 + $0x1], 1 }

</bundles_post_ra>
